<compile_context>
chip_gen: v6e
topology: v6e:2x2x1
jax: 0.10.0
libtpu: 0.0.40
codegen_flags: <defaults>
</compile_context>

<pallas_src>
import functools

import jax
import jax.numpy as jnp
from jax import lax
from jax.experimental import pallas as pl
from jax.experimental.pallas import tpu as pltpu

LN_EPS = 1e-5  # torch.nn.LayerNorm default


def _layernorm(x, gamma, beta):
    mean = jnp.mean(x, axis=-1, keepdims=True)
    var = jnp.mean(jnp.square(x - mean), axis=-1, keepdims=True)
    return (x - mean) * lax.rsqrt(var + LN_EPS) * gamma + beta


def _gelu_exact(x):
    # torch.nn.GELU() default = exact erf-based GELU
    return 0.5 * x * (1.0 + lax.erf(x * (2.0 ** -0.5)))


# ---------------------------------------------------------------------------
# Fused encoder kernel: all layers in one invocation, layers unrolled.
# ---------------------------------------------------------------------------
def encoder_kernel(x_ref,
                   ln1g_ref, ln1b_ref, wqkv_ref, wout_ref, bout_ref,
                   ln2g_ref, ln2b_ref, w1_ref, b1_ref, w2_ref, b2_ref,
                   lnfg_ref, lnfb_ref,
                   o_ref, *, B, N, n_heads, d_k, n_layers):
    dm = n_heads * d_k
    M = B * N

    x = x_ref[...]                               # (M, D) f32 residual stream

    for l in range(n_layers):                    # fully unrolled, static indices
        # ---- Attention block: x + Wout(MHSA(LN(x))) + bout -----------------
        xn = _layernorm(x, ln1g_ref[l], ln1b_ref[l])
        # fused qkv projection; 1/sqrt(d_k) already folded into the Wq columns
        qkv = jnp.dot(xn.astype(jnp.bfloat16), wqkv_ref[l],
                      preferred_element_type=jnp.float32)            # (M, 3*dm)
        qkv3 = qkv.reshape(B, N, 3 * dm)         # leading-dim split only (cheap)

        # Gather heads onto the LEADING axis so both attention matmuls are
        # batched over all (head, batch) pairs at once (2 MXU pushes / layer).
        qs, ks, vs = [], [], []
        for h in range(n_heads):                 # static lane slices of width d_k
            lo = h * d_k
            qs.append(qkv3[:, :, lo:lo + d_k])
            ks.append(qkv3[:, :, dm + lo:dm + lo + d_k])
            vs.append(qkv3[:, :, 2 * dm + lo:2 * dm + lo + d_k])
        qh = jnp.concatenate(qs, axis=0).astype(jnp.bfloat16)        # (H*B, N, d_k)
        kh = jnp.concatenate(ks, axis=0).astype(jnp.bfloat16)
        vh = jnp.concatenate(vs, axis=0).astype(jnp.bfloat16)

        s = lax.dot_general(qh, kh, (((2,), (2,)), ((0,), (0,))),
                            preferred_element_type=jnp.float32)      # (H*B, N, N)
        s = s - jnp.max(s, axis=-1, keepdims=True)
        p = jnp.exp(s)
        p = p * pl.reciprocal(jnp.sum(p, axis=-1, keepdims=True), approx=True)
        ctx = lax.dot_general(p.astype(jnp.bfloat16), vh,
                              (((2,), (1,)), ((0,), (0,))),
                              preferred_element_type=jnp.float32)    # (H*B, N, d_k)

        # back to (B, N, h*d_k) with head-major columns ('b h n d -> b n (h d)')
        o_heads = jnp.concatenate(
            [ctx[h * B:(h + 1) * B] for h in range(n_heads)], axis=-1)  # (B, N, dm)
        attn = jnp.dot(o_heads.reshape(M, dm).astype(jnp.bfloat16), wout_ref[l],
                       preferred_element_type=jnp.float32) + bout_ref[l]
        x = x + attn

        # ---- FeedForward block: x + W2(GELU(W1(LN(x)) + b1)) + b2 ----------
        xn2 = _layernorm(x, ln2g_ref[l], ln2b_ref[l])
        h1 = jnp.dot(xn2.astype(jnp.bfloat16), w1_ref[l],
                     preferred_element_type=jnp.float32) + b1_ref[l]
        h1 = _gelu_exact(h1)
        ffn = jnp.dot(h1.astype(jnp.bfloat16), w2_ref[l],
                      preferred_element_type=jnp.float32) + b2_ref[l]
        x = x + ffn

    # final LayerNorm (encoder-level norm)
    o_ref[...] = _layernorm(x, lnfg_ref[...], lnfb_ref[...])


# ---------------------------------------------------------------------------
# Parameter prep: stack per-layer params, fold the scale, cast weights to bf16.
# Done ONCE outside the hot path.
# ---------------------------------------------------------------------------
def prepare_stacked_params(params, n_heads, d_k):
    dm = n_heads * d_k
    scale = float(d_k) ** -0.5

    def stack(getter):
        return jnp.stack([getter(lp) for lp in params["layers"]], axis=0)

    wqkv = stack(lambda lp: lp["attn"]["wqkv"])              # (L, D, 3*dm) f32
    wqkv = wqkv.at[:, :, :dm].multiply(scale)                # fold 1/sqrt(d_k) into Wq
    return {
        "ln1_g": stack(lambda lp: lp["attn"]["ln_g"]),       # (L, 1, D)
        "ln1_b": stack(lambda lp: lp["attn"]["ln_b"]),
        "wqkv": wqkv.astype(jnp.bfloat16),                   # (L, D, 3*dm)
        "wout": stack(lambda lp: lp["attn"]["wout"]).astype(jnp.bfloat16),
        "bout": stack(lambda lp: lp["attn"]["bout"]),        # (L, 1, D)
        "ln2_g": stack(lambda lp: lp["ffn"]["ln_g"]),
        "ln2_b": stack(lambda lp: lp["ffn"]["ln_b"]),
        "w1": stack(lambda lp: lp["ffn"]["w1"]).astype(jnp.bfloat16),
        "b1": stack(lambda lp: lp["ffn"]["b1"]),             # (L, 1, mlp)
        "w2": stack(lambda lp: lp["ffn"]["w2"]).astype(jnp.bfloat16),
        "b2": stack(lambda lp: lp["ffn"]["b2"]),
        "lnf_g": params["final"]["ln_g"],                    # (1, D)
        "lnf_b": params["final"]["ln_b"],
    }


# ---------------------------------------------------------------------------
# Wrapper
# ---------------------------------------------------------------------------
@functools.partial(jax.jit, static_argnames=("n_heads", "d_k"))
def transformer_encoder(x, sp, *, n_heads, d_k):
    B, N, D = x.shape
    M = B * N
    n_layers = sp["wqkv"].shape[0]

    kernel = functools.partial(encoder_kernel, B=B, N=N, n_heads=n_heads,
                               d_k=d_k, n_layers=n_layers)

    vmem = pl.BlockSpec(memory_space=pltpu.MemorySpace.VMEM)  # whole array in VMEM
    out = pl.pallas_call(
        kernel,
        out_shape=jax.ShapeDtypeStruct((M, D), jnp.float32),
        in_specs=[vmem] * 14,
        out_specs=vmem,
    )(x.reshape(M, D),
      sp["ln1_g"], sp["ln1_b"], sp["wqkv"], sp["wout"], sp["bout"],
      sp["ln2_g"], sp["ln2_b"], sp["w1"], sp["b1"], sp["w2"], sp["b2"],
      sp["lnf_g"], sp["lnf_b"])
    return out.reshape(B, N, D)


# ---------------------------------------------------------------------------
# Deterministic parameter init (PyTorch-style shapes; synthetic values)
# ---------------------------------------------------------------------------
def _linear_init(key, fan_in, fan_out, bias=True):
    kw, kb = jax.random.split(key)
    bound = 1.0 / jnp.sqrt(fan_in)
    w = jax.random.uniform(kw, (fan_in, fan_out), jnp.float32, -bound, bound)
    if not bias:
        return w, None
    b = jax.random.uniform(kb, (1, fan_out), jnp.float32, -bound, bound)
    return w, b


def init_params(key, n_layers, n_heads, hid_dim, mlp_dim, d_k):
    dm = n_heads * d_k
    layers = []
    for _ in range(n_layers):
        key, k1, k2, k3, k4 = jax.random.split(key, 5)
        wqkv, _ = _linear_init(k1, hid_dim, 3 * dm, bias=False)
        wout, bout = _linear_init(k2, dm, hid_dim)
        w1, b1 = _linear_init(k3, hid_dim, mlp_dim)
        w2, b2 = _linear_init(k4, mlp_dim, hid_dim)
        layers.append({
            "attn": {"ln_g": jnp.ones((1, hid_dim), jnp.float32),
                     "ln_b": jnp.zeros((1, hid_dim), jnp.float32),
                     "wqkv": wqkv, "wout": wout, "bout": bout},
            "ffn": {"ln_g": jnp.ones((1, hid_dim), jnp.float32),
                    "ln_b": jnp.zeros((1, hid_dim), jnp.float32),
                    "w1": w1, "b1": b1, "w2": w2, "b2": b2},
        })
    return {"layers": layers,
            "final": {"ln_g": jnp.ones((1, hid_dim), jnp.float32),
                      "ln_b": jnp.zeros((1, hid_dim), jnp.float32)}}


# ---------------------------------------------------------------------------
# Pure-JAX f32 reference (mirrors the PyTorch forward exactly)
# ---------------------------------------------------------------------------
def ref_forward(x, params, n_heads, d_k):
    B, N, D = x.shape
    dm = n_heads * d_k
    for lp in params["layers"]:
        pa, pf = lp["attn"], lp["ffn"]
        xn = _layernorm(x, pa["ln_g"], pa["ln_b"])
        qkv = xn @ pa["wqkv"]
        q, k, v = jnp.split(qkv, 3, axis=-1)
        def heads(t):
            return t.reshape(B, N, n_heads, d_k).transpose(0, 2, 1, 3)
        q, k, v = heads(q), heads(k), heads(v)
        dots = jnp.einsum("bhqd,bhkd->bhqk", q, k) * (float(d_k) ** -0.5)
        attn = jax.nn.softmax(dots, axis=-1)
        o = jnp.einsum("bhqk,bhkd->bhqd", attn, v)
        o = o.transpose(0, 2, 1, 3).reshape(B, N, dm)
        x = o @ pa["wout"] + pa["bout"] + x
        xn = _layernorm(x, pf["ln_g"], pf["ln_b"])
        h = _gelu_exact(xn @ pf["w1"] + pf["b1"])
        x = h @ pf["w2"] + pf["b2"] + x
    return _layernorm(x, params["final"]["ln_g"], params["final"]["ln_b"])


if __name__ == "__main__":
    # Small ViT-style config consistent with the module's forward.
    B, N = 2, 8
    n_layers, n_heads, hid_dim, mlp_dim, d_k = 2, 4, 32, 64, 8

    key = jax.random.PRNGKey(0)
    kx, kp = jax.random.split(key)
    x = jax.random.normal(kx, (B, N, hid_dim), jnp.float32)
    params = init_params(kp, n_layers, n_heads, hid_dim, mlp_dim, d_k)

    # Hoisted out of the hot path: stacks / scale fold / bf16 casts happen once.
    sp = prepare_stacked_params(params, n_heads, d_k)

    out = transformer_encoder(x, sp, n_heads=n_heads, d_k=d_k)
    out = jax.block_until_ready(out)

    ref = ref_forward(x, params, n_heads, d_k)
    assert out.shape == (B, N, hid_dim)
    # Tolerance accounts for bf16 MXU operands (f32 accumulation) and the
    # approx EUP reciprocal in softmax vs the pure-f32 reference.
    max_err = float(jnp.max(jnp.abs(out - ref)))
    assert jnp.allclose(out, ref, atol=3e-2, rtol=3e-2), \
        f"mismatch vs reference (max abs err {max_err})"

    print("KERNEL_OK")
</pallas_src>

<mosaic_0001>
module attributes {stable_mosaic.version = 11 : i64} {
  func.func @encoder_kernel(%arg0: memref<16x32xf32, #tpu.memory_space<vmem>>, %arg1: memref<2x1x32xf32, #tpu.memory_space<vmem>>, %arg2: memref<2x1x32xf32, #tpu.memory_space<vmem>>, %arg3: memref<2x32x96xbf16, #tpu.memory_space<vmem>>, %arg4: memref<2x32x32xbf16, #tpu.memory_space<vmem>>, %arg5: memref<2x1x32xf32, #tpu.memory_space<vmem>>, %arg6: memref<2x1x32xf32, #tpu.memory_space<vmem>>, %arg7: memref<2x1x32xf32, #tpu.memory_space<vmem>>, %arg8: memref<2x32x64xbf16, #tpu.memory_space<vmem>>, %arg9: memref<2x1x64xf32, #tpu.memory_space<vmem>>, %arg10: memref<2x64x32xbf16, #tpu.memory_space<vmem>>, %arg11: memref<2x1x32xf32, #tpu.memory_space<vmem>>, %arg12: memref<1x32xf32, #tpu.memory_space<vmem>>, %arg13: memref<1x32xf32, #tpu.memory_space<vmem>>, %arg14: memref<16x32xf32, #tpu.memory_space<vmem>>) attributes {dimension_semantics = [], scalar_prefetch = 0 : i64, scratch_operands = 0 : i64, tpu.core_type = #tpu.core_type<tc>} {
    %c0 = arith.constant 0 : index
    %c0_0 = arith.constant 0 : index
    %0 = vector.load %arg0[%c0, %c0_0] : memref<16x32xf32, #tpu.memory_space<vmem>>, vector<16x32xf32>
    %c0_1 = arith.constant 0 : index
    %c0_2 = arith.constant 0 : index
    %c0_3 = arith.constant 0 : index
    %1 = vector.load %arg1[%c0_1, %c0_2, %c0_3] : memref<2x1x32xf32, #tpu.memory_space<vmem>>, vector<1x1x32xf32>
    %2 = vector.shape_cast %1 : vector<1x1x32xf32> to vector<1x32xf32>
    %c0_4 = arith.constant 0 : index
    %c0_5 = arith.constant 0 : index
    %c0_6 = arith.constant 0 : index
    %3 = vector.load %arg2[%c0_4, %c0_5, %c0_6] : memref<2x1x32xf32, #tpu.memory_space<vmem>>, vector<1x1x32xf32>
    %4 = vector.shape_cast %3 : vector<1x1x32xf32> to vector<1x32xf32>
    %cst = arith.constant dense<0.000000e+00> : vector<16xf32>
    %5 = vector.multi_reduction <add>, %0, %cst [1] : vector<16x32xf32> to vector<16xf32>
    %6 = vector.shape_cast %5 : vector<16xf32> to vector<16x1xf32>
    %cst_7 = arith.constant 3.200000e+01 : f32
    %7 = vector.broadcast %cst_7 : f32 to vector<16x1xf32>
    %8 = arith.divf %6, %7 : vector<16x1xf32>
    %9 = vector.broadcast %8 : vector<16x1xf32> to vector<16x32xf32>
    %10 = arith.subf %0, %9 : vector<16x32xf32>
    %11 = arith.mulf %10, %10 : vector<16x32xf32>
    %cst_8 = arith.constant dense<0.000000e+00> : vector<16xf32>
    %12 = vector.multi_reduction <add>, %11, %cst_8 [1] : vector<16x32xf32> to vector<16xf32>
    %13 = vector.shape_cast %12 : vector<16xf32> to vector<16x1xf32>
    %cst_9 = arith.constant 3.200000e+01 : f32
    %14 = vector.broadcast %cst_9 : f32 to vector<16x1xf32>
    %15 = arith.divf %13, %14 : vector<16x1xf32>
    %16 = vector.broadcast %8 : vector<16x1xf32> to vector<16x32xf32>
    %17 = arith.subf %0, %16 : vector<16x32xf32>
    %cst_10 = arith.constant 9.99999974E-6 : f32
    %18 = vector.broadcast %cst_10 : f32 to vector<16x1xf32>
    %19 = arith.addf %15, %18 : vector<16x1xf32>
    %20 = math.rsqrt %19 : vector<16x1xf32>
    %21 = vector.broadcast %20 : vector<16x1xf32> to vector<16x32xf32>
    %22 = arith.mulf %17, %21 : vector<16x32xf32>
    %23 = vector.broadcast %2 : vector<1x32xf32> to vector<16x32xf32>
    %24 = arith.mulf %22, %23 : vector<16x32xf32>
    %25 = vector.broadcast %4 : vector<1x32xf32> to vector<16x32xf32>
    %26 = arith.addf %24, %25 : vector<16x32xf32>
    %27 = arith.truncf %26 : vector<16x32xf32> to vector<16x32xbf16>
    %c0_11 = arith.constant 0 : index
    %c0_12 = arith.constant 0 : index
    %c0_13 = arith.constant 0 : index
    %28 = vector.load %arg3[%c0_11, %c0_12, %c0_13] : memref<2x32x96xbf16, #tpu.memory_space<vmem>>, vector<1x32x96xbf16>
    %29 = vector.shape_cast %28 : vector<1x32x96xbf16> to vector<32x96xbf16>
    %cst_14 = arith.constant dense<0.000000e+00> : vector<16x96xf32>
    %30 = tpu.matmul %27, %29, %cst_14 {dimension_numbers = #tpu.dot_dimension_numbers<[1], [0], [0], [1], [0, 0, 1, 1], [], []>} : vector<16x32xbf16>, vector<32x96xbf16>, vector<16x96xf32> -> vector<16x96xf32>
    %31 = vector.shape_cast %30 : vector<16x96xf32> to vector<2x8x96xf32>
    %32 = vector.extract_strided_slice %31 {offsets = [0, 0, 0], sizes = [2, 8, 8], strides = [1, 1, 1]} : vector<2x8x96xf32> to vector<2x8x8xf32>
    %33 = vector.extract_strided_slice %31 {offsets = [0, 0, 32], sizes = [2, 8, 8], strides = [1, 1, 1]} : vector<2x8x96xf32> to vector<2x8x8xf32>
    %34 = vector.extract_strided_slice %31 {offsets = [0, 0, 64], sizes = [2, 8, 8], strides = [1, 1, 1]} : vector<2x8x96xf32> to vector<2x8x8xf32>
    %35 = vector.extract_strided_slice %31 {offsets = [0, 0, 8], sizes = [2, 8, 8], strides = [1, 1, 1]} : vector<2x8x96xf32> to vector<2x8x8xf32>
    %36 = vector.extract_strided_slice %31 {offsets = [0, 0, 40], sizes = [2, 8, 8], strides = [1, 1, 1]} : vector<2x8x96xf32> to vector<2x8x8xf32>
    %37 = vector.extract_strided_slice %31 {offsets = [0, 0, 72], sizes = [2, 8, 8], strides = [1, 1, 1]} : vector<2x8x96xf32> to vector<2x8x8xf32>
    %38 = vector.extract_strided_slice %31 {offsets = [0, 0, 16], sizes = [2, 8, 8], strides = [1, 1, 1]} : vector<2x8x96xf32> to vector<2x8x8xf32>
    %39 = vector.extract_strided_slice %31 {offsets = [0, 0, 48], sizes = [2, 8, 8], strides = [1, 1, 1]} : vector<2x8x96xf32> to vector<2x8x8xf32>
    %40 = vector.extract_strided_slice %31 {offsets = [0, 0, 80], sizes = [2, 8, 8], strides = [1, 1, 1]} : vector<2x8x96xf32> to vector<2x8x8xf32>
    %41 = vector.extract_strided_slice %31 {offsets = [0, 0, 24], sizes = [2, 8, 8], strides = [1, 1, 1]} : vector<2x8x96xf32> to vector<2x8x8xf32>
    %42 = vector.extract_strided_slice %31 {offsets = [0, 0, 56], sizes = [2, 8, 8], strides = [1, 1, 1]} : vector<2x8x96xf32> to vector<2x8x8xf32>
    %43 = vector.extract_strided_slice %31 {offsets = [0, 0, 88], sizes = [2, 8, 8], strides = [1, 1, 1]} : vector<2x8x96xf32> to vector<2x8x8xf32>
    %44 = tpu.concatenate %32, %35, %38, %41 in 0 : vector<2x8x8xf32>, vector<2x8x8xf32>, vector<2x8x8xf32>, vector<2x8x8xf32> -> vector<8x8x8xf32>
    %45 = arith.truncf %44 : vector<8x8x8xf32> to vector<8x8x8xbf16>
    %46 = tpu.concatenate %33, %36, %39, %42 in 0 : vector<2x8x8xf32>, vector<2x8x8xf32>, vector<2x8x8xf32>, vector<2x8x8xf32> -> vector<8x8x8xf32>
    %47 = arith.truncf %46 : vector<8x8x8xf32> to vector<8x8x8xbf16>
    %48 = tpu.concatenate %34, %37, %40, %43 in 0 : vector<2x8x8xf32>, vector<2x8x8xf32>, vector<2x8x8xf32>, vector<2x8x8xf32> -> vector<8x8x8xf32>
    %49 = arith.truncf %48 : vector<8x8x8xf32> to vector<8x8x8xbf16>
    %cst_15 = arith.constant dense<0.000000e+00> : vector<8x8x8xf32>
    %50 = tpu.matmul %45, %47, %cst_15 {dimension_numbers = #tpu.dot_dimension_numbers<[2], [2], [1], [1], [0, 0, 0, 1, 1, 1], [0], [0]>} : vector<8x8x8xbf16>, vector<8x8x8xbf16>, vector<8x8x8xf32> -> vector<8x8x8xf32>
    %cst_16 = arith.constant dense<0xFF800000> : vector<8x8xf32>
    %51 = vector.multi_reduction <maximumf>, %50, %cst_16 [2] : vector<8x8x8xf32> to vector<8x8xf32>
    %52 = vector.shape_cast %51 : vector<8x8xf32> to vector<8x8x1xf32>
    %53 = vector.broadcast %52 : vector<8x8x1xf32> to vector<8x8x8xf32>
    %54 = arith.subf %50, %53 : vector<8x8x8xf32>
    %55 = math.exp %54 : vector<8x8x8xf32>
    %cst_17 = arith.constant dense<0.000000e+00> : vector<8x8xf32>
    %56 = vector.multi_reduction <add>, %55, %cst_17 [2] : vector<8x8x8xf32> to vector<8x8xf32>
    %57 = vector.shape_cast %56 : vector<8x8xf32> to vector<8x8x1xf32>
    %58 = tpu.reciprocal %57 {approx = true} : vector<8x8x1xf32> -> vector<8x8x1xf32>
    %59 = vector.broadcast %58 : vector<8x8x1xf32> to vector<8x8x8xf32>
    %60 = arith.mulf %55, %59 : vector<8x8x8xf32>
    %61 = arith.truncf %60 : vector<8x8x8xf32> to vector<8x8x8xbf16>
    %cst_18 = arith.constant dense<0.000000e+00> : vector<8x8x8xf32>
    %62 = tpu.matmul %61, %49, %cst_18 {dimension_numbers = #tpu.dot_dimension_numbers<[2], [1], [1], [2], [0, 0, 0, 1, 1, 2], [0], [0]>} : vector<8x8x8xbf16>, vector<8x8x8xbf16>, vector<8x8x8xf32> -> vector<8x8x8xf32>
    %63 = vector.extract_strided_slice %62 {offsets = [0, 0, 0], sizes = [2, 8, 8], strides = [1, 1, 1]} : vector<8x8x8xf32> to vector<2x8x8xf32>
    %64 = vector.extract_strided_slice %62 {offsets = [2, 0, 0], sizes = [2, 8, 8], strides = [1, 1, 1]} : vector<8x8x8xf32> to vector<2x8x8xf32>
    %65 = vector.extract_strided_slice %62 {offsets = [4, 0, 0], sizes = [2, 8, 8], strides = [1, 1, 1]} : vector<8x8x8xf32> to vector<2x8x8xf32>
    %66 = vector.extract_strided_slice %62 {offsets = [6, 0, 0], sizes = [2, 8, 8], strides = [1, 1, 1]} : vector<8x8x8xf32> to vector<2x8x8xf32>
    %67 = tpu.concatenate %63, %64, %65, %66 in 2 : vector<2x8x8xf32>, vector<2x8x8xf32>, vector<2x8x8xf32>, vector<2x8x8xf32> -> vector<2x8x32xf32>
    %68 = vector.shape_cast %67 : vector<2x8x32xf32> to vector<16x32xf32>
    %69 = arith.truncf %68 : vector<16x32xf32> to vector<16x32xbf16>
    %c0_19 = arith.constant 0 : index
    %c0_20 = arith.constant 0 : index
    %c0_21 = arith.constant 0 : index
    %70 = vector.load %arg4[%c0_19, %c0_20, %c0_21] : memref<2x32x32xbf16, #tpu.memory_space<vmem>>, vector<1x32x32xbf16>
    %71 = vector.shape_cast %70 : vector<1x32x32xbf16> to vector<32x32xbf16>
    %cst_22 = arith.constant dense<0.000000e+00> : vector<16x32xf32>
    %72 = tpu.matmul %69, %71, %cst_22 {dimension_numbers = #tpu.dot_dimension_numbers<[1], [0], [0], [1], [0, 0, 1, 1], [], []>} : vector<16x32xbf16>, vector<32x32xbf16>, vector<16x32xf32> -> vector<16x32xf32>
    %c0_23 = arith.constant 0 : index
    %c0_24 = arith.constant 0 : index
    %c0_25 = arith.constant 0 : index
    %73 = vector.load %arg5[%c0_23, %c0_24, %c0_25] : memref<2x1x32xf32, #tpu.memory_space<vmem>>, vector<1x1x32xf32>
    %74 = vector.shape_cast %73 : vector<1x1x32xf32> to vector<1x32xf32>
    %75 = vector.broadcast %74 : vector<1x32xf32> to vector<16x32xf32>
    %76 = arith.addf %72, %75 : vector<16x32xf32>
    %77 = arith.addf %0, %76 : vector<16x32xf32>
    %c0_26 = arith.constant 0 : index
    %c0_27 = arith.constant 0 : index
    %c0_28 = arith.constant 0 : index
    %78 = vector.load %arg6[%c0_26, %c0_27, %c0_28] : memref<2x1x32xf32, #tpu.memory_space<vmem>>, vector<1x1x32xf32>
    %79 = vector.shape_cast %78 : vector<1x1x32xf32> to vector<1x32xf32>
    %c0_29 = arith.constant 0 : index
    %c0_30 = arith.constant 0 : index
    %c0_31 = arith.constant 0 : index
    %80 = vector.load %arg7[%c0_29, %c0_30, %c0_31] : memref<2x1x32xf32, #tpu.memory_space<vmem>>, vector<1x1x32xf32>
    %81 = vector.shape_cast %80 : vector<1x1x32xf32> to vector<1x32xf32>
    %cst_32 = arith.constant dense<0.000000e+00> : vector<16xf32>
    %82 = vector.multi_reduction <add>, %77, %cst_32 [1] : vector<16x32xf32> to vector<16xf32>
    %83 = vector.shape_cast %82 : vector<16xf32> to vector<16x1xf32>
    %cst_33 = arith.constant 3.200000e+01 : f32
    %84 = vector.broadcast %cst_33 : f32 to vector<16x1xf32>
    %85 = arith.divf %83, %84 : vector<16x1xf32>
    %86 = vector.broadcast %85 : vector<16x1xf32> to vector<16x32xf32>
    %87 = arith.subf %77, %86 : vector<16x32xf32>
    %88 = arith.mulf %87, %87 : vector<16x32xf32>
    %cst_34 = arith.constant dense<0.000000e+00> : vector<16xf32>
    %89 = vector.multi_reduction <add>, %88, %cst_34 [1] : vector<16x32xf32> to vector<16xf32>
    %90 = vector.shape_cast %89 : vector<16xf32> to vector<16x1xf32>
    %cst_35 = arith.constant 3.200000e+01 : f32
    %91 = vector.broadcast %cst_35 : f32 to vector<16x1xf32>
    %92 = arith.divf %90, %91 : vector<16x1xf32>
    %93 = vector.broadcast %85 : vector<16x1xf32> to vector<16x32xf32>
    %94 = arith.subf %77, %93 : vector<16x32xf32>
    %cst_36 = arith.constant 9.99999974E-6 : f32
    %95 = vector.broadcast %cst_36 : f32 to vector<16x1xf32>
    %96 = arith.addf %92, %95 : vector<16x1xf32>
    %97 = math.rsqrt %96 : vector<16x1xf32>
    %98 = vector.broadcast %97 : vector<16x1xf32> to vector<16x32xf32>
    %99 = arith.mulf %94, %98 : vector<16x32xf32>
    %100 = vector.broadcast %79 : vector<1x32xf32> to vector<16x32xf32>
    %101 = arith.mulf %99, %100 : vector<16x32xf32>
    %102 = vector.broadcast %81 : vector<1x32xf32> to vector<16x32xf32>
    %103 = arith.addf %101, %102 : vector<16x32xf32>
    %104 = arith.truncf %103 : vector<16x32xf32> to vector<16x32xbf16>
    %c0_37 = arith.constant 0 : index
    %c0_38 = arith.constant 0 : index
    %c0_39 = arith.constant 0 : index
    %105 = vector.load %arg8[%c0_37, %c0_38, %c0_39] : memref<2x32x64xbf16, #tpu.memory_space<vmem>>, vector<1x32x64xbf16>
    %106 = vector.shape_cast %105 : vector<1x32x64xbf16> to vector<32x64xbf16>
    %cst_40 = arith.constant dense<0.000000e+00> : vector<16x64xf32>
    %107 = tpu.matmul %104, %106, %cst_40 {dimension_numbers = #tpu.dot_dimension_numbers<[1], [0], [0], [1], [0, 0, 1, 1], [], []>} : vector<16x32xbf16>, vector<32x64xbf16>, vector<16x64xf32> -> vector<16x64xf32>
    %c0_41 = arith.constant 0 : index
    %c0_42 = arith.constant 0 : index
    %c0_43 = arith.constant 0 : index
    %108 = vector.load %arg9[%c0_41, %c0_42, %c0_43] : memref<2x1x64xf32, #tpu.memory_space<vmem>>, vector<1x1x64xf32>
    %109 = vector.shape_cast %108 : vector<1x1x64xf32> to vector<1x64xf32>
    %110 = vector.broadcast %109 : vector<1x64xf32> to vector<16x64xf32>
    %111 = arith.addf %107, %110 : vector<16x64xf32>
    %cst_44 = arith.constant 5.000000e-01 : f32
    %112 = vector.broadcast %cst_44 : f32 to vector<16x64xf32>
    %113 = arith.mulf %112, %111 : vector<16x64xf32>
    %cst_45 = arith.constant 0.707106769 : f32
    %114 = vector.broadcast %cst_45 : f32 to vector<16x64xf32>
    %115 = arith.mulf %111, %114 : vector<16x64xf32>
    %116 = math.erf %115 : vector<16x64xf32>
    %cst_46 = arith.constant 1.000000e+00 : f32
    %117 = vector.broadcast %cst_46 : f32 to vector<16x64xf32>
    %118 = arith.addf %117, %116 : vector<16x64xf32>
    %119 = arith.mulf %113, %118 : vector<16x64xf32>
    %120 = arith.truncf %119 : vector<16x64xf32> to vector<16x64xbf16>
    %c0_47 = arith.constant 0 : index
    %c0_48 = arith.constant 0 : index
    %c0_49 = arith.constant 0 : index
    %121 = vector.load %arg10[%c0_47, %c0_48, %c0_49] : memref<2x64x32xbf16, #tpu.memory_space<vmem>>, vector<1x64x32xbf16>
    %122 = vector.shape_cast %121 : vector<1x64x32xbf16> to vector<64x32xbf16>
    %cst_50 = arith.constant dense<0.000000e+00> : vector<16x32xf32>
    %123 = tpu.matmul %120, %122, %cst_50 {dimension_numbers = #tpu.dot_dimension_numbers<[1], [0], [0], [1], [0, 0, 1, 1], [], []>} : vector<16x64xbf16>, vector<64x32xbf16>, vector<16x32xf32> -> vector<16x32xf32>
    %c0_51 = arith.constant 0 : index
    %c0_52 = arith.constant 0 : index
    %c0_53 = arith.constant 0 : index
    %124 = vector.load %arg11[%c0_51, %c0_52, %c0_53] : memref<2x1x32xf32, #tpu.memory_space<vmem>>, vector<1x1x32xf32>
    %125 = vector.shape_cast %124 : vector<1x1x32xf32> to vector<1x32xf32>
    %126 = vector.broadcast %125 : vector<1x32xf32> to vector<16x32xf32>
    %127 = arith.addf %123, %126 : vector<16x32xf32>
    %128 = arith.addf %77, %127 : vector<16x32xf32>
    %c1 = arith.constant 1 : index
    %c0_54 = arith.constant 0 : index
    %c0_55 = arith.constant 0 : index
    %129 = vector.load %arg1[%c1, %c0_54, %c0_55] : memref<2x1x32xf32, #tpu.memory_space<vmem>>, vector<1x1x32xf32>
    %130 = vector.shape_cast %129 : vector<1x1x32xf32> to vector<1x32xf32>
    %c1_56 = arith.constant 1 : index
    %c0_57 = arith.constant 0 : index
    %c0_58 = arith.constant 0 : index
    %131 = vector.load %arg2[%c1_56, %c0_57, %c0_58] : memref<2x1x32xf32, #tpu.memory_space<vmem>>, vector<1x1x32xf32>
    %132 = vector.shape_cast %131 : vector<1x1x32xf32> to vector<1x32xf32>
    %cst_59 = arith.constant dense<0.000000e+00> : vector<16xf32>
    %133 = vector.multi_reduction <add>, %128, %cst_59 [1] : vector<16x32xf32> to vector<16xf32>
    %134 = vector.shape_cast %133 : vector<16xf32> to vector<16x1xf32>
    %cst_60 = arith.constant 3.200000e+01 : f32
    %135 = vector.broadcast %cst_60 : f32 to vector<16x1xf32>
    %136 = arith.divf %134, %135 : vector<16x1xf32>
    %137 = vector.broadcast %136 : vector<16x1xf32> to vector<16x32xf32>
    %138 = arith.subf %128, %137 : vector<16x32xf32>
    %139 = arith.mulf %138, %138 : vector<16x32xf32>
    %cst_61 = arith.constant dense<0.000000e+00> : vector<16xf32>
    %140 = vector.multi_reduction <add>, %139, %cst_61 [1] : vector<16x32xf32> to vector<16xf32>
    %141 = vector.shape_cast %140 : vector<16xf32> to vector<16x1xf32>
    %cst_62 = arith.constant 3.200000e+01 : f32
    %142 = vector.broadcast %cst_62 : f32 to vector<16x1xf32>
    %143 = arith.divf %141, %142 : vector<16x1xf32>
    %144 = vector.broadcast %136 : vector<16x1xf32> to vector<16x32xf32>
    %145 = arith.subf %128, %144 : vector<16x32xf32>
    %cst_63 = arith.constant 9.99999974E-6 : f32
    %146 = vector.broadcast %cst_63 : f32 to vector<16x1xf32>
    %147 = arith.addf %143, %146 : vector<16x1xf32>
    %148 = math.rsqrt %147 : vector<16x1xf32>
    %149 = vector.broadcast %148 : vector<16x1xf32> to vector<16x32xf32>
    %150 = arith.mulf %145, %149 : vector<16x32xf32>
    %151 = vector.broadcast %130 : vector<1x32xf32> to vector<16x32xf32>
    %152 = arith.mulf %150, %151 : vector<16x32xf32>
    %153 = vector.broadcast %132 : vector<1x32xf32> to vector<16x32xf32>
    %154 = arith.addf %152, %153 : vector<16x32xf32>
    %155 = arith.truncf %154 : vector<16x32xf32> to vector<16x32xbf16>
    %c1_64 = arith.constant 1 : index
    %c0_65 = arith.constant 0 : index
    %c0_66 = arith.constant 0 : index
    %156 = vector.load %arg3[%c1_64, %c0_65, %c0_66] : memref<2x32x96xbf16, #tpu.memory_space<vmem>>, vector<1x32x96xbf16>
    %157 = vector.shape_cast %156 : vector<1x32x96xbf16> to vector<32x96xbf16>
    %cst_67 = arith.constant dense<0.000000e+00> : vector<16x96xf32>
    %158 = tpu.matmul %155, %157, %cst_67 {dimension_numbers = #tpu.dot_dimension_numbers<[1], [0], [0], [1], [0, 0, 1, 1], [], []>} : vector<16x32xbf16>, vector<32x96xbf16>, vector<16x96xf32> -> vector<16x96xf32>
    %159 = vector.shape_cast %158 : vector<16x96xf32> to vector<2x8x96xf32>
    %160 = vector.extract_strided_slice %159 {offsets = [0, 0, 0], sizes = [2, 8, 8], strides = [1, 1, 1]} : vector<2x8x96xf32> to vector<2x8x8xf32>
    %161 = vector.extract_strided_slice %159 {offsets = [0, 0, 32], sizes = [2, 8, 8], strides = [1, 1, 1]} : vector<2x8x96xf32> to vector<2x8x8xf32>
    %162 = vector.extract_strided_slice %159 {offsets = [0, 0, 64], sizes = [2, 8, 8], strides = [1, 1, 1]} : vector<2x8x96xf32> to vector<2x8x8xf32>
    %163 = vector.extract_strided_slice %159 {offsets = [0, 0, 8], sizes = [2, 8, 8], strides = [1, 1, 1]} : vector<2x8x96xf32> to vector<2x8x8xf32>
    %164 = vector.extract_strided_slice %159 {offsets = [0, 0, 40], sizes = [2, 8, 8], strides = [1, 1, 1]} : vector<2x8x96xf32> to vector<2x8x8xf32>
    %165 = vector.extract_strided_slice %159 {offsets = [0, 0, 72], sizes = [2, 8, 8], strides = [1, 1, 1]} : vector<2x8x96xf32> to vector<2x8x8xf32>
    %166 = vector.extract_strided_slice %159 {offsets = [0, 0, 16], sizes = [2, 8, 8], strides = [1, 1, 1]} : vector<2x8x96xf32> to vector<2x8x8xf32>
    %167 = vector.extract_strided_slice %159 {offsets = [0, 0, 48], sizes = [2, 8, 8], strides = [1, 1, 1]} : vector<2x8x96xf32> to vector<2x8x8xf32>
    %168 = vector.extract_strided_slice %159 {offsets = [0, 0, 80], sizes = [2, 8, 8], strides = [1, 1, 1]} : vector<2x8x96xf32> to vector<2x8x8xf32>
    %169 = vector.extract_strided_slice %159 {offsets = [0, 0, 24], sizes = [2, 8, 8], strides = [1, 1, 1]} : vector<2x8x96xf32> to vector<2x8x8xf32>
    %170 = vector.extract_strided_slice %159 {offsets = [0, 0, 56], sizes = [2, 8, 8], strides = [1, 1, 1]} : vector<2x8x96xf32> to vector<2x8x8xf32>
    %171 = vector.extract_strided_slice %159 {offsets = [0, 0, 88], sizes = [2, 8, 8], strides = [1, 1, 1]} : vector<2x8x96xf32> to vector<2x8x8xf32>
    %172 = tpu.concatenate %160, %163, %166, %169 in 0 : vector<2x8x8xf32>, vector<2x8x8xf32>, vector<2x8x8xf32>, vector<2x8x8xf32> -> vector<8x8x8xf32>
    %173 = arith.truncf %172 : vector<8x8x8xf32> to vector<8x8x8xbf16>
    %174 = tpu.concatenate %161, %164, %167, %170 in 0 : vector<2x8x8xf32>, vector<2x8x8xf32>, vector<2x8x8xf32>, vector<2x8x8xf32> -> vector<8x8x8xf32>
    %175 = arith.truncf %174 : vector<8x8x8xf32> to vector<8x8x8xbf16>
    %176 = tpu.concatenate %162, %165, %168, %171 in 0 : vector<2x8x8xf32>, vector<2x8x8xf32>, vector<2x8x8xf32>, vector<2x8x8xf32> -> vector<8x8x8xf32>
    %177 = arith.truncf %176 : vector<8x8x8xf32> to vector<8x8x8xbf16>
    %cst_68 = arith.constant dense<0.000000e+00> : vector<8x8x8xf32>
    %178 = tpu.matmul %173, %175, %cst_68 {dimension_numbers = #tpu.dot_dimension_numbers<[2], [2], [1], [1], [0, 0, 0, 1, 1, 1], [0], [0]>} : vector<8x8x8xbf16>, vector<8x8x8xbf16>, vector<8x8x8xf32> -> vector<8x8x8xf32>
    %cst_69 = arith.constant dense<0xFF800000> : vector<8x8xf32>
    %179 = vector.multi_reduction <maximumf>, %178, %cst_69 [2] : vector<8x8x8xf32> to vector<8x8xf32>
    %180 = vector.shape_cast %179 : vector<8x8xf32> to vector<8x8x1xf32>
    %181 = vector.broadcast %180 : vector<8x8x1xf32> to vector<8x8x8xf32>
    %182 = arith.subf %178, %181 : vector<8x8x8xf32>
    %183 = math.exp %182 : vector<8x8x8xf32>
    %cst_70 = arith.constant dense<0.000000e+00> : vector<8x8xf32>
    %184 = vector.multi_reduction <add>, %183, %cst_70 [2] : vector<8x8x8xf32> to vector<8x8xf32>
    %185 = vector.shape_cast %184 : vector<8x8xf32> to vector<8x8x1xf32>
    %186 = tpu.reciprocal %185 {approx = true} : vector<8x8x1xf32> -> vector<8x8x1xf32>
    %187 = vector.broadcast %186 : vector<8x8x1xf32> to vector<8x8x8xf32>
    %188 = arith.mulf %183, %187 : vector<8x8x8xf32>
    %189 = arith.truncf %188 : vector<8x8x8xf32> to vector<8x8x8xbf16>
    %cst_71 = arith.constant dense<0.000000e+00> : vector<8x8x8xf32>
    %190 = tpu.matmul %189, %177, %cst_71 {dimension_numbers = #tpu.dot_dimension_numbers<[2], [1], [1], [2], [0, 0, 0, 1, 1, 2], [0], [0]>} : vector<8x8x8xbf16>, vector<8x8x8xbf16>, vector<8x8x8xf32> -> vector<8x8x8xf32>
    %191 = vector.extract_strided_slice %190 {offsets = [0, 0, 0], sizes = [2, 8, 8], strides = [1, 1, 1]} : vector<8x8x8xf32> to vector<2x8x8xf32>
    %192 = vector.extract_strided_slice %190 {offsets = [2, 0, 0], sizes = [2, 8, 8], strides = [1, 1, 1]} : vector<8x8x8xf32> to vector<2x8x8xf32>
    %193 = vector.extract_strided_slice %190 {offsets = [4, 0, 0], sizes = [2, 8, 8], strides = [1, 1, 1]} : vector<8x8x8xf32> to vector<2x8x8xf32>
    %194 = vector.extract_strided_slice %190 {offsets = [6, 0, 0], sizes = [2, 8, 8], strides = [1, 1, 1]} : vector<8x8x8xf32> to vector<2x8x8xf32>
    %195 = tpu.concatenate %191, %192, %193, %194 in 2 : vector<2x8x8xf32>, vector<2x8x8xf32>, vector<2x8x8xf32>, vector<2x8x8xf32> -> vector<2x8x32xf32>
    %196 = vector.shape_cast %195 : vector<2x8x32xf32> to vector<16x32xf32>
    %197 = arith.truncf %196 : vector<16x32xf32> to vector<16x32xbf16>
    %c1_72 = arith.constant 1 : index
    %c0_73 = arith.constant 0 : index
    %c0_74 = arith.constant 0 : index
    %198 = vector.load %arg4[%c1_72, %c0_73, %c0_74] : memref<2x32x32xbf16, #tpu.memory_space<vmem>>, vector<1x32x32xbf16>
    %199 = vector.shape_cast %198 : vector<1x32x32xbf16> to vector<32x32xbf16>
    %cst_75 = arith.constant dense<0.000000e+00> : vector<16x32xf32>
    %200 = tpu.matmul %197, %199, %cst_75 {dimension_numbers = #tpu.dot_dimension_numbers<[1], [0], [0], [1], [0, 0, 1, 1], [], []>} : vector<16x32xbf16>, vector<32x32xbf16>, vector<16x32xf32> -> vector<16x32xf32>
    %c1_76 = arith.constant 1 : index
    %c0_77 = arith.constant 0 : index
    %c0_78 = arith.constant 0 : index
    %201 = vector.load %arg5[%c1_76, %c0_77, %c0_78] : memref<2x1x32xf32, #tpu.memory_space<vmem>>, vector<1x1x32xf32>
    %202 = vector.shape_cast %201 : vector<1x1x32xf32> to vector<1x32xf32>
    %203 = vector.broadcast %202 : vector<1x32xf32> to vector<16x32xf32>
    %204 = arith.addf %200, %203 : vector<16x32xf32>
    %205 = arith.addf %128, %204 : vector<16x32xf32>
    %c1_79 = arith.constant 1 : index
    %c0_80 = arith.constant 0 : index
    %c0_81 = arith.constant 0 : index
    %206 = vector.load %arg6[%c1_79, %c0_80, %c0_81] : memref<2x1x32xf32, #tpu.memory_space<vmem>>, vector<1x1x32xf32>
    %207 = vector.shape_cast %206 : vector<1x1x32xf32> to vector<1x32xf32>
    %c1_82 = arith.constant 1 : index
    %c0_83 = arith.constant 0 : index
    %c0_84 = arith.constant 0 : index
    %208 = vector.load %arg7[%c1_82, %c0_83, %c0_84] : memref<2x1x32xf32, #tpu.memory_space<vmem>>, vector<1x1x32xf32>
    %209 = vector.shape_cast %208 : vector<1x1x32xf32> to vector<1x32xf32>
    %cst_85 = arith.constant dense<0.000000e+00> : vector<16xf32>
    %210 = vector.multi_reduction <add>, %205, %cst_85 [1] : vector<16x32xf32> to vector<16xf32>
    %211 = vector.shape_cast %210 : vector<16xf32> to vector<16x1xf32>
    %cst_86 = arith.constant 3.200000e+01 : f32
    %212 = vector.broadcast %cst_86 : f32 to vector<16x1xf32>
    %213 = arith.divf %211, %212 : vector<16x1xf32>
    %214 = vector.broadcast %213 : vector<16x1xf32> to vector<16x32xf32>
    %215 = arith.subf %205, %214 : vector<16x32xf32>
    %216 = arith.mulf %215, %215 : vector<16x32xf32>
    %cst_87 = arith.constant dense<0.000000e+00> : vector<16xf32>
    %217 = vector.multi_reduction <add>, %216, %cst_87 [1] : vector<16x32xf32> to vector<16xf32>
    %218 = vector.shape_cast %217 : vector<16xf32> to vector<16x1xf32>
    %cst_88 = arith.constant 3.200000e+01 : f32
    %219 = vector.broadcast %cst_88 : f32 to vector<16x1xf32>
    %220 = arith.divf %218, %219 : vector<16x1xf32>
    %221 = vector.broadcast %213 : vector<16x1xf32> to vector<16x32xf32>
    %222 = arith.subf %205, %221 : vector<16x32xf32>
    %cst_89 = arith.constant 9.99999974E-6 : f32
    %223 = vector.broadcast %cst_89 : f32 to vector<16x1xf32>
    %224 = arith.addf %220, %223 : vector<16x1xf32>
    %225 = math.rsqrt %224 : vector<16x1xf32>
    %226 = vector.broadcast %225 : vector<16x1xf32> to vector<16x32xf32>
    %227 = arith.mulf %222, %226 : vector<16x32xf32>
    %228 = vector.broadcast %207 : vector<1x32xf32> to vector<16x32xf32>
    %229 = arith.mulf %227, %228 : vector<16x32xf32>
    %230 = vector.broadcast %209 : vector<1x32xf32> to vector<16x32xf32>
    %231 = arith.addf %229, %230 : vector<16x32xf32>
    %232 = arith.truncf %231 : vector<16x32xf32> to vector<16x32xbf16>
    %c1_90 = arith.constant 1 : index
    %c0_91 = arith.constant 0 : index
    %c0_92 = arith.constant 0 : index
    %233 = vector.load %arg8[%c1_90, %c0_91, %c0_92] : memref<2x32x64xbf16, #tpu.memory_space<vmem>>, vector<1x32x64xbf16>
    %234 = vector.shape_cast %233 : vector<1x32x64xbf16> to vector<32x64xbf16>
    %cst_93 = arith.constant dense<0.000000e+00> : vector<16x64xf32>
    %235 = tpu.matmul %232, %234, %cst_93 {dimension_numbers = #tpu.dot_dimension_numbers<[1], [0], [0], [1], [0, 0, 1, 1], [], []>} : vector<16x32xbf16>, vector<32x64xbf16>, vector<16x64xf32> -> vector<16x64xf32>
    %c1_94 = arith.constant 1 : index
    %c0_95 = arith.constant 0 : index
    %c0_96 = arith.constant 0 : index
    %236 = vector.load %arg9[%c1_94, %c0_95, %c0_96] : memref<2x1x64xf32, #tpu.memory_space<vmem>>, vector<1x1x64xf32>
    %237 = vector.shape_cast %236 : vector<1x1x64xf32> to vector<1x64xf32>
    %238 = vector.broadcast %237 : vector<1x64xf32> to vector<16x64xf32>
    %239 = arith.addf %235, %238 : vector<16x64xf32>
    %cst_97 = arith.constant 5.000000e-01 : f32
    %240 = vector.broadcast %cst_97 : f32 to vector<16x64xf32>
    %241 = arith.mulf %240, %239 : vector<16x64xf32>
    %cst_98 = arith.constant 0.707106769 : f32
    %242 = vector.broadcast %cst_98 : f32 to vector<16x64xf32>
    %243 = arith.mulf %239, %242 : vector<16x64xf32>
    %244 = math.erf %243 : vector<16x64xf32>
    %cst_99 = arith.constant 1.000000e+00 : f32
    %245 = vector.broadcast %cst_99 : f32 to vector<16x64xf32>
    %246 = arith.addf %245, %244 : vector<16x64xf32>
    %247 = arith.mulf %241, %246 : vector<16x64xf32>
    %248 = arith.truncf %247 : vector<16x64xf32> to vector<16x64xbf16>
    %c1_100 = arith.constant 1 : index
    %c0_101 = arith.constant 0 : index
    %c0_102 = arith.constant 0 : index
    %249 = vector.load %arg10[%c1_100, %c0_101, %c0_102] : memref<2x64x32xbf16, #tpu.memory_space<vmem>>, vector<1x64x32xbf16>
    %250 = vector.shape_cast %249 : vector<1x64x32xbf16> to vector<64x32xbf16>
    %cst_103 = arith.constant dense<0.000000e+00> : vector<16x32xf32>
    %251 = tpu.matmul %248, %250, %cst_103 {dimension_numbers = #tpu.dot_dimension_numbers<[1], [0], [0], [1], [0, 0, 1, 1], [], []>} : vector<16x64xbf16>, vector<64x32xbf16>, vector<16x32xf32> -> vector<16x32xf32>
    %c1_104 = arith.constant 1 : index
    %c0_105 = arith.constant 0 : index
    %c0_106 = arith.constant 0 : index
    %252 = vector.load %arg11[%c1_104, %c0_105, %c0_106] : memref<2x1x32xf32, #tpu.memory_space<vmem>>, vector<1x1x32xf32>
    %253 = vector.shape_cast %252 : vector<1x1x32xf32> to vector<1x32xf32>
    %254 = vector.broadcast %253 : vector<1x32xf32> to vector<16x32xf32>
    %255 = arith.addf %251, %254 : vector<16x32xf32>
    %256 = arith.addf %205, %255 : vector<16x32xf32>
    %c0_107 = arith.constant 0 : index
    %c0_108 = arith.constant 0 : index
    %257 = vector.load %arg12[%c0_107, %c0_108] : memref<1x32xf32, #tpu.memory_space<vmem>>, vector<1x32xf32>
    %c0_109 = arith.constant 0 : index
    %c0_110 = arith.constant 0 : index
    %258 = vector.load %arg13[%c0_109, %c0_110] : memref<1x32xf32, #tpu.memory_space<vmem>>, vector<1x32xf32>
    %cst_111 = arith.constant dense<0.000000e+00> : vector<16xf32>
    %259 = vector.multi_reduction <add>, %256, %cst_111 [1] : vector<16x32xf32> to vector<16xf32>
    %260 = vector.shape_cast %259 : vector<16xf32> to vector<16x1xf32>
    %cst_112 = arith.constant 3.200000e+01 : f32
    %261 = vector.broadcast %cst_112 : f32 to vector<16x1xf32>
    %262 = arith.divf %260, %261 : vector<16x1xf32>
    %263 = vector.broadcast %262 : vector<16x1xf32> to vector<16x32xf32>
    %264 = arith.subf %256, %263 : vector<16x32xf32>
    %265 = arith.mulf %264, %264 : vector<16x32xf32>
    %cst_113 = arith.constant dense<0.000000e+00> : vector<16xf32>
    %266 = vector.multi_reduction <add>, %265, %cst_113 [1] : vector<16x32xf32> to vector<16xf32>
    %267 = vector.shape_cast %266 : vector<16xf32> to vector<16x1xf32>
    %cst_114 = arith.constant 3.200000e+01 : f32
    %268 = vector.broadcast %cst_114 : f32 to vector<16x1xf32>
    %269 = arith.divf %267, %268 : vector<16x1xf32>
    %270 = vector.broadcast %262 : vector<16x1xf32> to vector<16x32xf32>
    %271 = arith.subf %256, %270 : vector<16x32xf32>
    %cst_115 = arith.constant 9.99999974E-6 : f32
    %272 = vector.broadcast %cst_115 : f32 to vector<16x1xf32>
    %273 = arith.addf %269, %272 : vector<16x1xf32>
    %274 = math.rsqrt %273 : vector<16x1xf32>
    %275 = vector.broadcast %274 : vector<16x1xf32> to vector<16x32xf32>
    %276 = arith.mulf %271, %275 : vector<16x32xf32>
    %277 = vector.broadcast %257 : vector<1x32xf32> to vector<16x32xf32>
    %278 = arith.mulf %276, %277 : vector<16x32xf32>
    %279 = vector.broadcast %258 : vector<1x32xf32> to vector<16x32xf32>
    %280 = arith.addf %278, %279 : vector<16x32xf32>
    %c0_116 = arith.constant 0 : index
    %c0_117 = arith.constant 0 : index
    %281 = vector.load %arg14[%c0_116, %c0_117] : memref<16x32xf32, #tpu.memory_space<vmem>>, vector<16x32xf32>
    tpu.vector_store %arg14[%c0_116, %c0_117], %280 {strides = array<i32>} : memref<16x32xf32, #tpu.memory_space<vmem>>, vector<16x32xf32>,
    return
  }
}

</mosaic_0001>

<bundles_post_ra>
// kernel: transformer_encoder.1
= control target key start
LH: loop header
LB: loop body
LE: loop exit
PB: predicated region body
PF: predicated region fallthrough
CT: control target
= control target key end

     0   :  { %19 = vsyncpa [#allocation3], 0  ;;  %s4236_s0 = inlined_call_operand.hbm [shape: f32[16,32], index: 0, kind: input, shape index: {}]   ;;  %s4237_s1 = inlined_call_operand.vmem [shape: f32[2,1,32], index: 1, kind: input, shape index: {}]   ;;  %s4238_s2 = inlined_call_operand.vmem [shape: f32[2,1,32], index: 2, kind: input, shape index: {}]   ;;  %s4239_s3 = inlined_call_operand.vmem [shape: bf16[2,32,96], index: 3, kind: input, shape index: {}]   ;;  %s4240_s4 = inlined_call_operand.vmem [shape: bf16[2,32,32], index: 4, kind: input, shape index: {}]   ;;  %s4241_s5 = inlined_call_operand.vmem [shape: f32[2,1,32], index: 5, kind: input, shape index: {}]   ;;  %s4242_s6 = inlined_call_operand.vmem [shape: f32[2,1,32], index: 6, kind: input, shape index: {}]   ;;  %s4243_s7 = inlined_call_operand.vmem [shape: f32[2,1,32], index: 7, kind: input, shape index: {}]   ;;  %s4244_s8 = inlined_call_operand.vmem [shape: bf16[2,32,64], index: 8, kind: input, shape index: {}]   ;;  %s4245_s9 = inlined_call_operand.hbm [shape: f32[2,1,64], index: 9, kind: input, shape index: {}]   ;;  %s4246_s10 = inlined_call_operand.vmem [shape: bf16[2,64,32], index: 10, kind: input, shape index: {}]   ;;  %s4247_s11 = inlined_call_operand.hbm [shape: f32[2,1,32], index: 11, kind: input, shape index: {}]   ;;  %s4248_s12 = inlined_call_operand.vmem [shape: f32[1,32], index: 12, kind: input, shape index: {}]   ;;  %s4249_s13 = inlined_call_operand.vmem [shape: f32[1,32], index: 13, kind: input, shape index: {}]   ;;  %s4250_s14 = inlined_call_operand.hbm [shape: f32[16,32], index: 14, kind: output, shape index: {}]  }
   0x1   :  { %20 = vsyncpa [#allocation6], 0 }
   0x2   :  { %21 = vsyncpa [#allocation4], 0  ;;  %s3531_s29 = smov [#allocation5]  }
   0x3   :  { %s55_s30 = sshll.u32 %s3531_s29, 4  ;;  %s56_s30 = int_to_ptr.vmem [resolvable:$true] %s55_s30 }
   0x4   :  { %s3453_s15 = scalar_lea.vmem %s56_s30, 32  ;;  %p3458_p1 = scmp.lt.s32.totalorder %s56_s30, %s56_s30 }
   0x5   :  { %p3454_p0 = scmp.ne.s32.totalorder %s56_s30, %s3453_s15  ;;  %p3459_p2 = scmp.lt.s32.totalorder %s3453_s15, %s3453_s15 }
   0x7   :  { %p3460_p3 = por %p3459_p2, %p3458_p1 }
   0x9   :  { %p3461_p4 = pnand %p3460_p3, %p3454_p0 }
   0xb   :  { %3464 = shalt.err (!%p3461_p4)
}
   0xc   :  { %s3532_s16 = smov 16   ;;  %s3533_s17 = smov 1  }
   0xd   :  { %61 = dma.hbm_to_vmem [thread:$0]  %s4245_s9, 32, %s56_s30, [#allocation6], %s3532_s16, %s3532_s16, %s3533_s17  }
   0xe   :  { %s3534_s20 = smov [#allocation2]  }
   0xf   :  { %s27_s21 = sshll.u32 %s3534_s20, 4  ;;  %s28_s21 = int_to_ptr.vmem [resolvable:$true] %s27_s21 }
  0x10   :  { %s3473_s22 = scalar_lea.vmem %s28_s21, 256  ;;  %p3478_p6 = scmp.lt.s32.totalorder %s28_s21, %s28_s21 }
  0x11   :  { %p3474_p5 = scmp.ne.s32.totalorder %s28_s21, %s3473_s22  ;;  %p3479_p7 = scmp.lt.s32.totalorder %s3473_s22, %s3473_s22 }
  0x13   :  { %p3480_p8 = por %p3479_p7, %p3478_p6 }
  0x15   :  { %p3481_p9 = pnand %p3480_p8, %p3474_p5 }
  0x17   :  { %3484 = shalt.err (!%p3481_p9)
}
  0x18   :  { %s3535_s23 = smov 128   ;;  %s3536_s24 = smov 8  }
  0x19   :  { %33 = dma.hbm_to_vmem [thread:$0]  %s4236_s0, 256, %s28_s21, [#allocation3], %s3535_s23, %s3535_s23, %s3536_s24  }
  0x1a   :  { %s3537_s9 = smov [#allocation7]  }
  0x1b   :  { %s69_s27 = sshll.u32 %s3537_s9, 4  ;;  %s70_s27 = int_to_ptr.vmem [resolvable:$true] %s69_s27 }
  0x1c   :  { %s3493_s28 = scalar_lea.vmem %s70_s27, 32  ;;  %p3498_p11 = scmp.lt.s32.totalorder %s70_s27, %s70_s27 }
  0x1d   :  { %p3494_p10 = scmp.ne.s32.totalorder %s70_s27, %s3493_s28  ;;  %p3499_p12 = scmp.lt.s32.totalorder %s3493_s28, %s3493_s28 }
  0x1f   :  { %p3500_p13 = por %p3499_p12, %p3498_p11 }
  0x21   :  { %p3501_p0 = pnand %p3500_p13, %p3494_p10 }
  0x23   :  { %3504 = shalt.err (!%p3501_p0)
}
  0x24   :  { %75 = dma.hbm_to_vmem [thread:$0]  %s4247_s11, 32, %s70_s27, [#allocation6], %s3532_s16, %s3532_s16, %s3533_s17  }
  0x25   :  { %3525 = dma.done.wait [#allocation3], 256  }
  0x26   :  { %3526 = vsyncadd [#allocation3], 4294967040 }
  0x27   :  { %3527 = dma.done.wait [#allocation6], 64  }
  0x28   :  { %3528 = vsyncadd [#allocation6], 4294967232  ;;  %vm94_vm0 = vcmask 261120   ;;  %v3638_v0 = vld [vmem:[#allocation2] sm:$0xff]  ;;  %v3640_v1 = vld [vmem:[#allocation2 + $0x8] sm:$0xff]  ;;  %v3538_v15 = vmov 0.0  }
  0x29   :  { %v95_v2 = vsel %vm94_vm0, %v3638_v0, 0.0  ;;  %v98_v3 = vsel %vm94_vm0, %v3640_v1, 0.0  ;;  %v3333_v14 = vld [vmem:[%s4239_s3 + $0x8] sm:$0xff]   ;;  %2993 = vmatprep.subr.bf16.mxu1 %v3538_v15  ;;  %vm3539_vm1 = vmmov 0   ;;  %v3334_v16 = vld [vmem:[%s4239_s3] sm:$0xff]   ;;  %3007 = vmatprep.subr.bf16.mxu0 %v3538_v15  ;;  %s3540_s22 = smov 112  }
  0x2a   :  { %96 = vadd.xlane.f32.xlu0 %v95_v2  ;;  %2997 = vmatprep.mubr.msk.bf16.mxu1 %vm3539_vm1, %v3538_v15  ;;  %v2800_v25 = vld [vmem:[%s4237_s1] ss:$0 sm:$0xff]  ;;  %s3541_s25 = smov 120   ;;  %s3542_s26 = smov 104   ;;  %vm230_vm2 = vcmask 64512   ;;  %vm721_vm3 = vcmask 1043456  }
  0x2b   :  { %2994 = vmatpush3.bf16.msra.mxu1 %v3333_v14  ;;  %3009 = vmatprep.mubr.msk.bf16.mxu0 %vm3539_vm1, %v3538_v15  ;;  %v2801_v29 = vld [vmem:[%s4238_s2] ss:$0 sm:$0xff]  ;;  %s3543_s9 = smov 96   ;;  %s3544_s27 = smov 64   ;;  %vm1127_vm4 = vcmask 130048   ;;  %vm1130_vm5 = vcmask 195584  }
  0x2c   :  { %2995 = vmatprep.subr.bf16.mxu1 %v3538_v15  ;;  %s3545_s11 = smov 24   ;;  %vm1365_vm6 = vcmask 523264  }
  0x2e   :  { %99 = vadd.xlane.f32.xlu0 %v98_v3 }
  0x2f   :  { %2996 = vmatpush3.bf16.msra.mxu1 %v3334_v16 }
  0x30   :  { %3001 = vmatprep.subr.bf16.mxu1 %v3538_v15 }
  0xb3   :  { %v97_v4 = vpop.xlane.xlu0 %96 }
  0xb4   :  { %v102_v5 = vmul.f32 0.03125, %v97_v4 }
  0xb6   :  { %v104_v6 = vsub.f32 %v3638_v0, %v102_v5 }
  0xb7   :  { %v100_v7 = vpop.xlane.xlu0 %99 }
  0xb8   :  { %v103_v8 = vmul.f32 0.03125, %v100_v7  ;;  %v106_v9 = vmul.f32 %v104_v6, %v104_v6 }
  0xba   :  { %v105_v10 = vsub.f32 %v3640_v1, %v103_v8  ;;  %v108_v11 = vsel %vm94_vm0, %v106_v9, 0.0 }
  0xbb   :  { %109 = vadd.xlane.f32.xlu1 %v108_v11 }
  0xbc   :  { %v107_v12 = vmul.f32 %v105_v10, %v105_v10 }
  0xbe   :  { %v111_v13 = vsel %vm94_vm0, %v107_v12, 0.0 }
  0xbf   :  { %112 = vadd.xlane.f32.xlu1 %v111_v13 }
 0x144   :  { %v110_v17 = vpop.xlane.xlu1 %109 }
 0x145   :  { %v114_v18 = vmul.f32 0.03125, %v110_v17 }
 0x147   :  { %v116_v19 = vadd.f32 1e-05, %v114_v18 }
 0x148   :  { %v113_v20 = vpop.xlane.xlu1 %112 }
 0x149   :  { %3353 = vrsqrt.f32 %v116_v19  ;;  %v115_v21 = vmul.f32 0.03125, %v113_v20 }
 0x14b   :  { %v117_v22 = vadd.f32 1e-05, %v115_v21 }
 0x14d   :  { %3355 = vrsqrt.f32 %v117_v22 }
 0x156   :  { %v3354_v23 = vpop.eup %3353 }
 0x157   :  { %v120_v24 = vmul.f32 %v3354_v23, %v104_v6 }
 0x159   :  { %v128_v28 = vmul.f32 %v2800_v25, %v120_v24 }
 0x15a   :  { %v3356_v26 = vpop.eup %3355 }
 0x15b   :  { %v121_v27 = vmul.f32 %v3356_v26, %v105_v10  ;;  %v136_v31 = vadd.f32 %v2801_v29, %v128_v28 }
 0x15d   :  { %v129_v30 = vmul.f32 %v2800_v25, %v121_v27 }
 0x15f   :  { %v137_v32 = vadd.f32 %v2801_v29, %v129_v30 }
 0x161   :  { %v138_v33 = vpack.c.bf16 %v137_v32, %v136_v31 }
 0x163   :  { %2998 = vmatmul.mubr.msk.bf16.vlgmr.msra.gmra.mxu1 %vm94_vm0, %v138_v33 }
 0x164   :  { %3003 = vmatprep.mubr.msk.bf16.mxu1 %vm3539_vm1, %v3538_v15 }
 0x223   :  { %v192_v34 = vpop.f32.mrf.mxu1 }
 0x224   :  { %v219_v40 = vpack.c.bf16 %v192_v34, %v192_v34 }
 0x225   :  { %v2999_v35 = vpop.f32.mrf.mxu1 }
 0x227   :  { %v195_v36 = vpop.f32.mrf.mxu1 }
 0x228   :  { %v3278_v37 = vpack.i.bf16 %v195_v36, %v192_v34  ;;  %v3675_v39 = vpack.c.bf16 %v195_v36, %v195_v36 }
 0x229   :  { %v3000_v38 = vpop.f32.mrf.mxu1 }
 0x22a   :  { %3279 = vrot.lane.b32.xlu1 %v3278_v37, %s3540_s22  ;;  %3274 = vrot.lane.b32.xlu0 %v3278_v37, %s3541_s25 }
 0x22e   :  { %3284 = vrot.lane.b32.xlu1 %v3278_v37, %s3542_s26  ;;  %278 = vrot.lane.b32.xlu0 %v3675_v39, %s3543_s9 }
 0x232   :  { %228 = vrot.lane.b32.xlu1 %v219_v40, %s3543_s9 }
 0x29c   :  { %v3280_v41 = vpop.permute.xlu1 %3279  ;;  %v3275_v42 = vpop.permute.xlu0 %3274 }
 0x29d   :  { %v3277_v43 = vunpack.i.h.bf16 %v3275_v42  ;;  %v3276_v44 = vunpack.i.l.bf16 %v3275_v42  ;;  %v3282_v45 = vunpack.i.h.bf16 %v3280_v41  ;;  %v3281_v46 = vunpack.i.l.bf16 %v3280_v41 }
 0x29f   :  { %v3681_v47 = vpack.c.bf16 %v3277_v43, %v3277_v43  ;;  %v3683_v48 = vpack.c.bf16 %v3276_v44, %v3276_v44  ;;  %v3690_v52 = vpack.c.bf16 %v3282_v45, %v3282_v45  ;;  %v3692_v53 = vpack.c.bf16 %v3281_v46, %v3281_v46 }
 0x2a0   :  { %v3285_v49 = vpop.permute.xlu1 %3284  ;;  %v279_v50 = vpop.permute.xlu0 %278 }
 0x2a1   :  { %327 = vrot.lane.b32.xlu1 %v3683_v48, %s3543_s9  ;;  %376 = vrot.lane.b32.xlu0 %v3681_v47, %s3543_s9  ;;  %v284_v51 = vsel %vm230_vm2, %v279_v50, 0  ;;  %v3287_v54 = vunpack.i.h.bf16 %v3285_v49  ;;  %v3286_v55 = vunpack.i.l.bf16 %v3285_v49 }
 0x2a2   :  { %3008 = vmatpush3.bf16.xpose.msra.mxu0 %v284_v51 }
 0x2a3   :  { %3019 = vmatprep.subr.bf16.mxu0 %v3538_v15  ;;  %v3700_v58 = vpack.c.bf16 %v3287_v54, %v3287_v54  ;;  %v3702_v59 = vpack.c.bf16 %v3286_v55, %v3286_v55 }
 0x2a4   :  { %v229_v56 = vpop.permute.xlu1 %228 }
 0x2a5   :  { %v235_v57 = vsel %vm230_vm2, %v229_v56, 0  ;;  %425 = vrot.lane.b32.xlu1 %v3692_v53, %s3543_s9  ;;  %474 = vrot.lane.b32.xlu0 %v3690_v52, %s3543_s9 }
 0x2a6   :  { %3002 = vmatpush3.bf16.xpose.msra.mxu1 %v235_v57 }
 0x2a7   :  { %3013 = vmatprep.subr.bf16.mxu1 %v3538_v15 }
 0x2a9   :  { %523 = vrot.lane.b32.xlu1 %v3702_v59, %s3543_s9  ;;  %572 = vrot.lane.b32.xlu0 %v3700_v58, %s3543_s9 }
 0x2aa   :  { %3010 = vmatmul.mubr.msk.bf16.vlgmr.msra.gmra.mxu0 %vm230_vm2, %v3675_v39 }
 0x2ab   :  { %3021 = vmatprep.mubr.msk.bf16.mxu0 %vm3539_vm1, %v3538_v15 }
 0x2ad   :  { %3004 = vmatmul.mubr.msk.bf16.vlgmr.msra.gmra.mxu1 %vm230_vm2, %v219_v40  ;;  %716 = vrot.lane.b32.xlu1 %v219_v40, %s3544_s27 }
 0x2ae   :  { %3015 = vmatprep.mubr.msk.bf16.mxu1 %vm3539_vm1, %v3538_v15 }
 0x313   :  { %v328_v60 = vpop.permute.xlu1 %327  ;;  %v377_v61 = vpop.permute.xlu0 %376 }
 0x314   :  { %v333_v62 = vsel %vm230_vm2, %v328_v60, 0  ;;  %v382_v63 = vsel %vm230_vm2, %v377_v61, 0 }
 0x315   :  { %3014 = vmatpush3.bf16.xpose.msra.mxu1 %v333_v62  ;;  %3020 = vmatpush3.bf16.xpose.msra.mxu0 %v382_v63 }
 0x316   :  { %3025 = vmatprep.subr.bf16.mxu1 %v3538_v15  ;;  %3031 = vmatprep.subr.bf16.mxu0 %v3538_v15 }
 0x317   :  { %v426_v2 = vpop.permute.xlu1 %425  ;;  %v475_v3 = vpop.permute.xlu0 %474 }
 0x318   :  { %v431_v4 = vsel %vm230_vm2, %v426_v2, 0  ;;  %v480_v5 = vsel %vm230_vm2, %v475_v3, 0 }
 0x31b   :  { %v524_v6 = vpop.permute.xlu1 %523  ;;  %v573_v7 = vpop.permute.xlu0 %572 }
 0x31c   :  { %3016 = vmatmul.mubr.msk.bf16.vlgmr.msra.gmra.mxu1 %vm230_vm2, %v3683_v48  ;;  %3022 = vmatmul.mubr.msk.bf16.vlgmr.msra.gmra.mxu0 %vm230_vm2, %v3681_v47  ;;  %v529_v8 = vsel %vm230_vm2, %v524_v6, 0  ;;  %v578_v9 = vsel %vm230_vm2, %v573_v7, 0 }
 0x31d   :  { %3026 = vmatpush3.bf16.xpose.msra.mxu1 %v431_v4  ;;  %3032 = vmatpush3.bf16.xpose.msra.mxu0 %v480_v5 }
 0x31e   :  { %3027 = vmatprep.mubr.msk.bf16.mxu1 %vm3539_vm1, %v3538_v15  ;;  %3033 = vmatprep.mubr.msk.bf16.mxu0 %vm3539_vm1, %v3538_v15 }
 0x31f   :  { %3037 = vmatprep.subr.bf16.mxu1 %v3538_v15  ;;  %3043 = vmatprep.subr.bf16.mxu0 %v3538_v15  ;;  %v717_v10 = vpop.permute.xlu1 %716 }
 0x320   :  { %v723_v11 = vsel %vm721_vm3, %v717_v10, 0 }
 0x324   :  { %3028 = vmatmul.mubr.msk.bf16.vlgmr.msra.gmra.mxu1 %vm230_vm2, %v3692_v53  ;;  %3034 = vmatmul.mubr.msk.bf16.vlgmr.msra.gmra.mxu0 %vm230_vm2, %v3690_v52 }
 0x325   :  { %3038 = vmatpush3.bf16.xpose.msra.mxu1 %v529_v8  ;;  %3044 = vmatpush3.bf16.xpose.msra.mxu0 %v578_v9 }
 0x326   :  { %3039 = vmatprep.mubr.msk.bf16.mxu1 %vm3539_vm1, %v3538_v15  ;;  %3045 = vmatprep.mubr.msk.bf16.mxu0 %vm3539_vm1, %v3538_v15 }
 0x327   :  { %3049 = vmatprep.subr.bf16.mxu1 %v3538_v15  ;;  %3055 = vmatprep.subr.bf16.mxu0 %v3538_v15 }
 0x32c   :  { %3040 = vmatmul.mubr.msk.bf16.vlgmr.msra.gmra.mxu1 %vm230_vm2, %v3702_v59  ;;  %3046 = vmatmul.mubr.msk.bf16.vlgmr.msra.gmra.mxu0 %vm230_vm2, %v3700_v58 }
 0x32d   :  { %3050 = vmatpush3.bf16.msra.mxu1 %v723_v11  ;;  %3057 = vmatprep.mubr.msk.bf16.mxu0 %vm3539_vm1, %v3538_v15 }
 0x32e   :  { %3051 = vmatprep.mubr.msk.bf16.mxu1 %vm3539_vm1, %v3538_v15  ;;  %3061 = vmatprep.subr.bf16.mxu1 %v3538_v15 }
 0x36a   :  { %v320_v12 = vpop.f32.mrf.mxu0 }
 0x36b   :  { %v623_v13 = vsel %vm230_vm2, %v320_v12, -inf }
 0x36c   :  { %624 = vmax.xlane.f32.xlu0 %v623_v13  ;;  %v3011_v14 = vpop.f32.mrf.mxu0 }
 0x36d   :  { %v271_v16 = vpop.f32.mrf.mxu1 }
 0x36e   :  { %v323_v17 = vpop.f32.mrf.mxu0  ;;  %v620_v18 = vsel %vm230_vm2, %v271_v16, -inf }
 0x36f   :  { %621 = vmax.xlane.f32.xlu1 %v620_v18  ;;  %v3005_v19 = vpop.f32.mrf.mxu1 }
 0x370   :  { %v3012_v20 = vpop.f32.mrf.mxu0 }
 0x371   :  { %v274_v21 = vpop.f32.mrf.mxu1 }
 0x373   :  { %v3006_v22 = vpop.f32.mrf.mxu1 }
 0x3dc   :  { %v369_v23 = vpop.f32.mrf.mxu1  ;;  %v418_v24 = vpop.f32.mrf.mxu0 }
 0x3dd   :  { %v626_v25 = vsel %vm230_vm2, %v369_v23, -inf  ;;  %v629_v30 = vsel %vm230_vm2, %v418_v24, -inf }
 0x3de   :  { %v3023_v26 = vpop.f32.mrf.mxu0  ;;  %627 = vmax.xlane.f32.xlu0 %v626_v25  ;;  %v3017_v27 = vpop.f32.mrf.mxu1 }
 0x3e0   :  { %v372_v28 = vpop.f32.mrf.mxu1  ;;  %v421_v29 = vpop.f32.mrf.mxu0 }
 0x3e2   :  { %v3024_v31 = vpop.f32.mrf.mxu0  ;;  %630 = vmax.xlane.f32.xlu0 %v629_v30  ;;  %v3018_v32 = vpop.f32.mrf.mxu1 }
 0x3e4   :  { %v467_v33 = vpop.f32.mrf.mxu1  ;;  %v3759_v34 = vpop.f32.mrf.mxu0 }
 0x3e5   :  { %v635_v35 = vsel %vm230_vm2, %v3759_v34, -inf  ;;  %v632_v36 = vsel %vm230_vm2, %v467_v33, -inf }
 0x3e6   :  { %v3035_v37 = vpop.f32.mrf.mxu0  ;;  %636 = vmax.xlane.f32.xlu0 %v635_v35  ;;  %633 = vmax.xlane.f32.xlu1 %v632_v36  ;;  %v3029_v38 = vpop.f32.mrf.mxu1 }
 0x3e8   :  { %v470_v40 = vpop.f32.mrf.mxu1  ;;  %v519_v41 = vpop.f32.mrf.mxu0 }
 0x3ea   :  { %v3030_v42 = vpop.f32.mrf.mxu1  ;;  %v3036_v43 = vpop.f32.mrf.mxu0 }
 0x3ec   :  { %v565_v44 = vpop.f32.mrf.mxu1  ;;  %v3764_v45 = vpop.f32.mrf.mxu0 }
 0x3ed   :  { %v641_v46 = vsel %vm230_vm2, %v3764_v45, -inf  ;;  %v638_v49 = vsel %vm230_vm2, %v565_v44, -inf }
 0x3ee   :  { %v3047_v50 = vpop.f32.mrf.mxu0  ;;  %642 = vmax.xlane.f32.xlu0 %v641_v46  ;;  %639 = vmax.xlane.f32.xlu1 %v638_v49  ;;  %v3041_v51 = vpop.f32.mrf.mxu1 }
 0x3f0   :  { %v568_v54 = vpop.f32.mrf.mxu1  ;;  %v617_v55 = vpop.f32.mrf.mxu0 }
 0x3f2   :  { %v3042_v56 = vpop.f32.mrf.mxu1  ;;  %v3048_v57 = vpop.f32.mrf.mxu0 }
 0x3f5   :  { %v625_v60 = vpop.xlane.xlu0 %624 }
 0x3f6   :  { %v645_v61 = vsub.f32 %v320_v12, %v625_v60 }
 0x3f8   :  { %v622_v62 = vpop.xlane.xlu1 %621  ;;  %v654_v63 = vmul.f32 1.442695, %v645_v61 }
 0x3f9   :  { %v644_v2 = vsub.f32 %v271_v16, %v622_v62 }
 0x3fa   :  { %3357 = vpow2.f32 %v654_v63 }
 0x3fb   :  { %v652_v3 = vmul.f32 1.442695, %v644_v2 }
 0x3fd   :  { %3359 = vpow2.f32 %v652_v3 }
 0x3ff   :  { %813 = vrot.lane.b32.xlu1 %v3683_v48, %s3544_s27 }
 0x403   :  { %861 = vrot.lane.b32.xlu1 %v3681_v47, %s3544_s27 }
 0x404   :  { %765 = vrot.lane.b32.xlu0 %v3675_v39, %s3544_s27 }
 0x407   :  { %v3358_v4 = vpop.eup %3357 }
 0x408   :  { %v671_v5 = vsel %vm230_vm2, %v3358_v4, 0.0 }
 0x40a   :  { %v3776_v6 = vpop.eup %3359 }
 0x40b   :  { %v668_v47 = vsel %vm230_vm2, %v3776_v6, 0.0 }
 0x423   :  { %672 = vadd.xlane.f32.xlu0 %v671_v5 }
 0x427   :  { %669 = vadd.xlane.f32.xlu1 %v668_v47 }
 0x438   :  { %909 = vrot.lane.b32.xlu1 %v3692_v53, %s3544_s27 }
 0x467   :  { %v628_v39 = vpop.xlane.xlu0 %627 }
 0x468   :  { %v646_v48 = vsub.f32 %v369_v23, %v628_v39 }
 0x46a   :  { %v656_v7 = vmul.f32 1.442695, %v646_v48 }
 0x46b   :  { %v631_v8 = vpop.xlane.xlu0 %630 }
 0x46c   :  { %3361 = vpow2.f32 %v656_v7  ;;  %v647_v9 = vsub.f32 %v418_v24, %v631_v8 }
 0x46e   :  { %v658_v10 = vmul.f32 1.442695, %v647_v9 }
 0x46f   :  { %v634_v11 = vpop.xlane.xlu1 %633  ;;  %v637_v14 = vpop.xlane.xlu0 %636 }
 0x470   :  { %3363 = vpow2.f32 %v658_v10  ;;  %v648_v12 = vsub.f32 %v467_v33, %v634_v11  ;;  %v649_v29 = vsub.f32 %v3759_v34, %v637_v14 }
 0x472   :  { %v660_v13 = vmul.f32 1.442695, %v648_v12  ;;  %v662_v30 = vmul.f32 1.442695, %v649_v29 }
 0x474   :  { %3365 = vpow2.f32 %v660_v13 }
 0x477   :  { %v643_v16 = vpop.xlane.xlu0 %642  ;;  %v640_v17 = vpop.xlane.xlu1 %639 }
 0x478   :  { %v650_v18 = vsub.f32 %v565_v44, %v640_v17  ;;  %v651_v31 = vsub.f32 %v3764_v45, %v643_v16 }
 0x479   :  { %v3782_v19 = vpop.eup %3361 }
 0x47a   :  { %v664_v20 = vmul.f32 1.442695, %v650_v18  ;;  %v674_v53 = vsel %vm230_vm2, %v3782_v19, 0.0  ;;  %v666_v32 = vmul.f32 1.442695, %v651_v31 }
 0x47b   :  { %v766_v21 = vpop.permute.xlu0 %765  ;;  %675 = vadd.xlane.f32.xlu1 %v674_v53  ;;  %v814_v33 = vpop.permute.xlu1 %813 }
 0x47c   :  { %v771_v22 = vsel %vm721_vm3, %v766_v21, 0  ;;  %3367 = vpow2.f32 %v664_v20  ;;  %v819_v49 = vsel %vm721_vm3, %v814_v33, 0 }
 0x47d   :  { %v3787_v23 = vpop.eup %3363  ;;  %3056 = vmatpush3.bf16.msra.mxu0 %v771_v22  ;;  %3369 = vpow2.f32 %v662_v30 }
 0x47e   :  { %v677_v24 = vsel %vm230_vm2, %v3787_v23, 0.0  ;;  %3067 = vmatprep.subr.bf16.mxu0 %v3538_v15  ;;  %3371 = vpow2.f32 %v666_v32 }
 0x47f   :  { %678 = vadd.xlane.f32.xlu0 %v677_v24  ;;  %v862_v35 = vpop.permute.xlu1 %861 }
 0x480   :  { %v867_v44 = vsel %vm721_vm3, %v862_v35, 0 }
 0x481   :  { %v3792_v25 = vpop.eup %3365 }
 0x482   :  { %v680_v26 = vsel %vm230_vm2, %v3792_v25, 0.0 }
 0x483   :  { %681 = vadd.xlane.f32.xlu1 %v680_v26 }
 0x489   :  { %v3796_v27 = vpop.eup %3367 }
 0x48a   :  { %v686_v28 = vsel %vm230_vm2, %v3796_v27, 0.0  ;;  %v3806_v37 = vpop.eup %3369 }
 0x48b   :  { %687 = vadd.xlane.f32.xlu1 %v686_v28  ;;  %v3810_v34 = vpop.eup %3371 }
 0x495   :  { %957 = vrot.lane.b32.xlu0 %v3690_v52, %s3544_s27  ;;  %v683_v52 = vsel %vm230_vm2, %v3806_v37, 0.0 }
 0x49c   :  { %1005 = vrot.lane.b32.xlu1 %v3702_v59, %s3544_s27  ;;  %v689_v59 = vsel %vm230_vm2, %v3810_v34, 0.0 }
 0x4ac   :  { %v673_v36 = vpop.xlane.xlu0 %672 }
 0x4ad   :  { %3373 = vrcp.f32 %v673_v36 }
 0x4b0   :  { %v670_v38 = vpop.xlane.xlu1 %669 }
 0x4b1   :  { %3375 = vrcp.f32 %v670_v38 }
 0x4b4   :  { %684 = vadd.xlane.f32.xlu0 %v683_v52  ;;  %v910_v50 = vpop.permute.xlu1 %909 }
 0x4b5   :  { %v915_v63 = vsel %vm721_vm3, %v910_v50, 0 }
 0x4b8   :  { %690 = vadd.xlane.f32.xlu0 %v689_v59 }
 0x4ba   :  { %v3374_v40 = vpop.eup %3373 }
 0x4bb   :  { %v701_v41 = vmul.f32 %v3374_v40, %v3358_v4 }
 0x4bd   :  { %v709_v42 = vpack.c.bf16 %v701_v41, %v701_v41 }
 0x4be   :  { %v3376_v43 = vpop.eup %3375 }
 0x4bf   :  { %3058 = vmatmul.mubr.msk.bf16.vlgmr.msra.gmra.mxu0 %vm230_vm2, %v709_v42  ;;  %v700_v45 = vmul.f32 %v3376_v43, %v3776_v6 }
 0x4c0   :  { %3068 = vmatpush3.bf16.msra.mxu0 %v867_v44  ;;  %3069 = vmatprep.mubr.msk.bf16.mxu0 %vm3539_vm1, %v3538_v15  ;;  %v3335_v44 = vld [vmem:[%s4240_s4 + $0x8] sm:$0xff]  }
 0x4c1   :  { %v708_v46 = vpack.c.bf16 %v700_v45, %v700_v45  ;;  %3079 = vmatprep.subr.bf16.mxu0 %v3538_v15 }
 0x4c3   :  { %3052 = vmatmul.mubr.msk.bf16.vlgmr.msra.gmra.mxu1 %vm230_vm2, %v708_v46  ;;  %v3336_v46 = vld [vmem:[%s4240_s4] sm:$0xff]  }
 0x4c4   :  { %3062 = vmatpush3.bf16.msra.mxu1 %v819_v49  ;;  %3063 = vmatprep.mubr.msk.bf16.mxu1 %vm3539_vm1, %v3538_v15 }
 0x4c5   :  { %3073 = vmatprep.subr.bf16.mxu1 %v3538_v15 }
 0x4ce   :  { %1053 = vrot.lane.b32.xlu0 %v3700_v58, %s3544_s27 }
 0x504   :  { %v676_v51 = vpop.xlane.xlu1 %675 }
 0x505   :  { %3377 = vrcp.f32 %v676_v51 }
 0x508   :  { %v679_v54 = vpop.xlane.xlu0 %678 }
 0x509   :  { %3379 = vrcp.f32 %v679_v54 }
 0x50c   :  { %v682_v55 = vpop.xlane.xlu1 %681  ;;  %v958_v2 = vpop.permute.xlu0 %957 }
 0x50d   :  { %3381 = vrcp.f32 %v682_v55  ;;  %v963_v5 = vsel %vm721_vm3, %v958_v2, 0 }
 0x512   :  { %v3378_v56 = vpop.eup %3377 }
 0x513   :  { %v702_v57 = vmul.f32 %v3378_v56, %v3782_v19 }
 0x514   :  { %v688_v60 = vpop.xlane.xlu1 %687 }
 0x515   :  { %v710_v61 = vpack.c.bf16 %v702_v57, %v702_v57  ;;  %3383 = vrcp.f32 %v688_v60 }
 0x516   :  { %v3380_v62 = vpop.eup %3379 }
 0x517   :  { %3064 = vmatmul.mubr.msk.bf16.vlgmr.msra.gmra.mxu1 %vm230_vm2, %v710_v61  ;;  %v703_v58 = vmul.f32 %v3380_v62, %v3787_v23 }
 0x518   :  { %3074 = vmatpush3.bf16.msra.mxu1 %v915_v63  ;;  %3075 = vmatprep.mubr.msk.bf16.mxu1 %vm3539_vm1, %v3538_v15  ;;  %v1006_v47 = vpop.permute.xlu1 %1005 }
 0x519   :  { %v711_v3 = vpack.c.bf16 %v703_v58, %v703_v58  ;;  %3085 = vmatprep.subr.bf16.mxu1 %v3538_v15  ;;  %v1011_v48 = vsel %vm721_vm3, %v1006_v47, 0 }
 0x51a   :  { %v3382_v4 = vpop.eup %3381 }
 0x51b   :  { %3070 = vmatmul.mubr.msk.bf16.vlgmr.msra.gmra.mxu0 %vm230_vm2, %v711_v3  ;;  %v704_v6 = vmul.f32 %v3382_v4, %v3792_v25 }
 0x51c   :  { %3080 = vmatpush3.bf16.msra.mxu0 %v963_v5  ;;  %3081 = vmatprep.mubr.msk.bf16.mxu0 %vm3539_vm1, %v3538_v15 }
 0x51d   :  { %3091 = vmatprep.subr.bf16.mxu0 %v3538_v15  ;;  %v712_v39 = vpack.c.bf16 %v704_v6, %v704_v6 }
 0x51f   :  { %3076 = vmatmul.mubr.msk.bf16.vlgmr.msra.gmra.mxu1 %vm230_vm2, %v712_v39 }
 0x520   :  { %3086 = vmatpush3.bf16.msra.mxu1 %v1011_v48  ;;  %3087 = vmatprep.mubr.msk.bf16.mxu1 %vm3539_vm1, %v3538_v15 }
 0x521   :  { %3097 = vmatprep.subr.bf16.mxu1 %v3538_v15 }
 0x522   :  { %v3384_v7 = vpop.eup %3383 }
 0x523   :  { %v706_v8 = vmul.f32 %v3384_v7, %v3796_v27 }
 0x525   :  { %v714_v9 = vpack.c.bf16 %v706_v8, %v706_v8 }
 0x527   :  { %3088 = vmatmul.mubr.msk.bf16.vlgmr.msra.gmra.mxu1 %vm230_vm2, %v714_v9 }
 0x528   :  { %3101 = vmatprep.mubr.msk.bf16.mxu1 %vm3539_vm1, %v3538_v15  ;;  %3098 = vmatpush3.bf16.msra.mxu1 %v3335_v44  ;;  %v2826_v44 = vld [vmem:[%s4243_s7] ss:$0 sm:$0xff] }
 0x529   :  { %3099 = vmatprep.subr.bf16.mxu1 %v3538_v15 }
 0x52c   :  { %3100 = vmatpush3.bf16.msra.mxu1 %v3336_v46 }
 0x52d   :  { %3113 = vmatprep.subr.bf16.mxu1 %v3538_v15 }
 0x53d   :  { %v685_v10 = vpop.xlane.xlu0 %684 }
 0x53e   :  { %3385 = vrcp.f32 %v685_v10 }
 0x541   :  { %v691_v11 = vpop.xlane.xlu0 %690 }
 0x542   :  { %3387 = vrcp.f32 %v691_v11 }
 0x545   :  { %v1054_v14 = vpop.permute.xlu0 %1053 }
 0x546   :  { %v1059_v18 = vsel %vm721_vm3, %v1054_v14, 0 }
 0x54b   :  { %v3386_v12 = vpop.eup %3385 }
 0x54c   :  { %v705_v13 = vmul.f32 %v3386_v12, %v3806_v37  ;;  %v2821_v12 = vld [vmem:[%s4241_s5] ss:$0 sm:$0xff] }
 0x54e   :  { %v713_v16 = vpack.c.bf16 %v705_v13, %v705_v13 }
 0x54f   :  { %v3388_v17 = vpop.eup %3387 }
 0x550   :  { %3082 = vmatmul.mubr.msk.bf16.vlgmr.msra.gmra.mxu0 %vm230_vm2, %v713_v16  ;;  %v707_v19 = vmul.f32 %v3388_v17, %v3810_v34 }
 0x551   :  { %3092 = vmatpush3.bf16.msra.mxu0 %v1059_v18  ;;  %3093 = vmatprep.mubr.msk.bf16.mxu0 %vm3539_vm1, %v3538_v15 }
 0x552   :  { %3105 = vmatprep.subr.bf16.mxu0 %v3538_v15  ;;  %v715_v20 = vpack.c.bf16 %v707_v19, %v707_v19 }
 0x558   :  { %3094 = vmatmul.mubr.msk.bf16.vlgmr.msra.gmra.mxu0 %vm230_vm2, %v715_v20 }
 0x559   :  { %3109 = vmatprep.mubr.msk.bf16.mxu0 %vm3539_vm1, %v3538_v15 }
 0x57f   :  { %v807_v53 = vpop.f32.mrf.mxu0 }
 0x581   :  { %v3059_v21 = vpop.f32.mrf.mxu0 }
 0x583   :  { %v759_v22 = vpop.f32.mrf.mxu1  ;;  %v810_v23 = vpop.f32.mrf.mxu0 }
 0x585   :  { %v3053_v24 = vpop.f32.mrf.mxu1  ;;  %v3060_v25 = vpop.f32.mrf.mxu0 }
 0x587   :  { %v762_v26 = vpop.f32.mrf.mxu1 }
 0x589   :  { %v3054_v27 = vpop.f32.mrf.mxu1 }
 0x5d7   :  { %v855_v28 = vpop.f32.mrf.mxu1 }
 0x5d9   :  { %v3065_v29 = vpop.f32.mrf.mxu1 }
 0x5db   :  { %v858_v30 = vpop.f32.mrf.mxu1  ;;  %v903_v31 = vpop.f32.mrf.mxu0 }
 0x5dc   :  { %v3288_v32 = vpack.i.bf16 %v903_v31, %v855_v28  ;;  %v3337_v31 = vld [vmem:[%s4244_s8 + $0x8] sm:$0xff]  }
 0x5dd   :  { %v3066_v33 = vpop.f32.mrf.mxu1  ;;  %v3071_v35 = vpop.f32.mrf.mxu0  ;;  %3106 = vmatpush3.bf16.msra.mxu0 %v3337_v31  ;;  %v3344_v31 = vld [vmem:[%s4239_s3 + $0x10] sm:$0xff]  }
 0x5de   :  { %3289 = vrot.lane.b32.xlu1 %v3288_v32, %s3536_s24  ;;  %v3338_v32 = vld [vmem:[%s4244_s8] sm:$0xff]   ;;  %3107 = vmatprep.subr.bf16.mxu0 %v3538_v15 }
 0x5df   :  { %v906_v36 = vpop.f32.mrf.mxu0  ;;  %v951_v37 = vpop.f32.mrf.mxu1 }
 0x5e1   :  { %v3072_v38 = vpop.f32.mrf.mxu0  ;;  %v3077_v52 = vpop.f32.mrf.mxu1  ;;  %3108 = vmatpush3.bf16.msra.mxu0 %v3338_v32 }
 0x5e2   :  { %3125 = vmatprep.subr.bf16.mxu0 %v3538_v15 }
 0x5e3   :  { %v954_v34 = vpop.f32.mrf.mxu1 }
 0x5e5   :  { %v3078_v59 = vpop.f32.mrf.mxu1 }
 0x5e7   :  { %v1047_v40 = vpop.f32.mrf.mxu1 }
 0x5e9   :  { %v3089_v41 = vpop.f32.mrf.mxu1 }
 0x5eb   :  { %v1050_v42 = vpop.f32.mrf.mxu1 }
 0x5ed   :  { %v3090_v43 = vpop.f32.mrf.mxu1 }
 0x610   :  { %v999_v45 = vpop.f32.mrf.mxu0 }
 0x611   :  { %v3293_v49 = vpack.i.bf16 %v999_v45, %v951_v37 }
 0x612   :  { %v3083_v50 = vpop.f32.mrf.mxu0 }
 0x613   :  { %3294 = vrot.lane.b32.xlu0 %v3293_v49, %s3532_s16 }
 0x614   :  { %v1002_v51 = vpop.f32.mrf.mxu0 }
 0x615   :  { %v3339_v51 = vld [vmem:[%s4246_s10 + $0x18] sm:$0xff]  }
 0x616   :  { %v3084_v54 = vpop.f32.mrf.mxu0 }
 0x617   :  { %v3340_v54 = vld [vmem:[%s4246_s10 + $0x10] sm:$0xff]  }
 0x618   :  { %v1095_v55 = vpop.f32.mrf.mxu0 }
 0x619   :  { %v3298_v56 = vpack.i.bf16 %v1095_v55, %v1047_v40  ;;  %v2825_v40 = vld [vmem:[%s4242_s6] ss:$0 sm:$0xff]  ;;  %v3341_v55 = vld [vmem:[%s4246_s10 + $0x8] sm:$0xff]  }
 0x61a   :  { %v3095_v57 = vpop.f32.mrf.mxu0 }
 0x61b   :  { %3299 = vrot.lane.b32.xlu1 %v3298_v56, %s3545_s11  ;;  %v3342_v56 = vld [vmem:[%s4246_s10] sm:$0xff]   ;;  %v2827_v57 = vld [vmem:[#allocation5] ss:$0 sm:$0xff] }
 0x61c   :  { %v1098_v60 = vpop.f32.mrf.mxu0 }
 0x61e   :  { %v3096_v61 = vpop.f32.mrf.mxu0 }
 0x650   :  { %v3290_v62 = vpop.permute.xlu1 %3289 }
 0x651   :  { %v3292_v58 = vunpack.i.h.bf16 %v3290_v62  ;;  %v3291_v2 = vunpack.i.l.bf16 %v3290_v62 }
 0x653   :  { %v1126_v6 = vsel %vm230_vm2, %v807_v53, %v3292_v58  ;;  %v1125_v47 = vsel %vm230_vm2, %v759_v22, %v3291_v2 }
 0x685   :  { %v3295_v63 = vpop.permute.xlu0 %3294 }
 0x686   :  { %v3297_v3 = vunpack.i.h.bf16 %v3295_v63  ;;  %v3296_v4 = vunpack.i.l.bf16 %v3295_v63 }
 0x688   :  { %v1129_v7 = vsel %vm1127_vm4, %v1126_v6, %v3297_v3  ;;  %v1128_v8 = vsel %vm1127_vm4, %v1125_v47, %v3296_v4 }
 0x68d   :  { %v3300_v5 = vpop.permute.xlu1 %3299 }
 0x68e   :  { %v3302_v39 = vunpack.i.h.bf16 %v3300_v5  ;;  %v3301_v48 = vunpack.i.l.bf16 %v3300_v5 }
 0x690   :  { %v1132_v9 = vsel %vm1130_vm5, %v1129_v7, %v3302_v39  ;;  %v1131_v10 = vsel %vm1130_vm5, %v1128_v8, %v3301_v48 }
 0x691   :  { %v1133_v11 = vpack.c.bf16 %v1132_v9, %v1131_v10 }
 0x693   :  { %3102 = vmatmul.mubr.msk.bf16.vlgmr.msra.gmra.mxu1 %vm94_vm0, %v1133_v11  ;;  %v2831_v11 = vld [vmem:[#allocation7] ss:$0 sm:$0xff] }
 0x694   :  { %3121 = vmatprep.mubr.msk.bf16.mxu1 %vm3539_vm1, %v3538_v15  ;;  %3114 = vmatpush3.bf16.msra.mxu1 %v3339_v51 }
 0x695   :  { %3115 = vmatprep.subr.bf16.mxu1 %v3538_v15 }
 0x698   :  { %3116 = vmatpush3.bf16.msra.mxu1 %v3340_v54 }
 0x699   :  { %3117 = vmatprep.subr.bf16.mxu1 %v3538_v15 }
 0x69c   :  { %3118 = vmatpush3.bf16.msra.mxu1 %v3341_v55 }
 0x69d   :  { %3119 = vmatprep.subr.bf16.mxu1 %v3538_v15 }
 0x6a0   :  { %3120 = vmatpush3.bf16.msra.mxu1 %v3342_v56 }
 0x6a1   :  { %3139 = vmatprep.subr.bf16.mxu1 %v3538_v15 }
 0x753   :  { %v1194_v13 = vpop.f32.mrf.mxu1 }
 0x754   :  { %v1195_v14 = vadd.f32 %v2821_v12, %v1194_v13 }
 0x755   :  { %v3103_v16 = vpop.f32.mrf.mxu1 }
 0x756   :  { %v3883_v17 = vadd.f32 %v1195_v14, %v3638_v0 }
 0x757   :  { %v1197_v18 = vpop.f32.mrf.mxu1 }
 0x758   :  { %v1198_v19 = vadd.f32 %v2821_v12, %v1197_v18  ;;  %v1205_v20 = vsel %vm94_vm0, %v3883_v17, 0.0 }
 0x759   :  { %1206 = vadd.xlane.f32.xlu0 %v1205_v20  ;;  %v3104_v53 = vpop.f32.mrf.mxu1 }
 0x75a   :  { %v3888_v21 = vadd.f32 %v1198_v19, %v3640_v1 }
 0x75c   :  { %v1208_v22 = vsel %vm94_vm0, %v3888_v21, 0.0 }
 0x75d   :  { %1209 = vadd.xlane.f32.xlu1 %v1208_v22 }
 0x7e2   :  { %v1207_v23 = vpop.xlane.xlu0 %1206 }
 0x7e3   :  { %v1211_v24 = vmul.f32 0.03125, %v1207_v23 }
 0x7e5   :  { %v1213_v25 = vsub.f32 %v3883_v17, %v1211_v24 }
 0x7e6   :  { %v1210_v0 = vpop.xlane.xlu1 %1209 }
 0x7e7   :  { %v1212_v26 = vmul.f32 0.03125, %v1210_v0  ;;  %v1215_v27 = vmul.f32 %v1213_v25, %v1213_v25 }
 0x7e9   :  { %v1214_v28 = vsub.f32 %v3888_v21, %v1212_v26  ;;  %v1217_v29 = vsel %vm94_vm0, %v1215_v27, 0.0 }
 0x7ea   :  { %1218 = vadd.xlane.f32.xlu0 %v1217_v29 }
 0x7eb   :  { %v1216_v30 = vmul.f32 %v1214_v28, %v1214_v28 }
 0x7ed   :  { %v1220_v1 = vsel %vm94_vm0, %v1216_v30, 0.0 }
 0x7ee   :  { %1221 = vadd.xlane.f32.xlu0 %v1220_v1  ;;  %v3343_v1 = vld [vmem:[%s4239_s3 + $0x18] sm:$0xff]  }
 0x873   :  { %v1219_v33 = vpop.xlane.xlu0 %1218 }
 0x874   :  { %v1223_v35 = vmul.f32 0.03125, %v1219_v33 }
 0x876   :  { %v1225_v36 = vadd.f32 1e-05, %v1223_v35 }
 0x877   :  { %v1222_v37 = vpop.xlane.xlu0 %1221 }
 0x878   :  { %3389 = vrsqrt.f32 %v1225_v36  ;;  %v1224_v38 = vmul.f32 0.03125, %v1222_v37 }
 0x87a   :  { %v1226_v52 = vadd.f32 1e-05, %v1224_v38 }
 0x87c   :  { %3391 = vrsqrt.f32 %v1226_v52 }
 0x885   :  { %v3390_v34 = vpop.eup %3389 }
 0x886   :  { %v1229_v59 = vmul.f32 %v3390_v34, %v1213_v25 }
 0x888   :  { %v1237_v43 = vmul.f32 %v2825_v40, %v1229_v59  ;;  %v2839_v59 = vld [vmem:[%s4237_s1 + $0x1] ss:$0 sm:$0xff]  ;;  %s3546_s1 = smov [#allocation8]  }
 0x889   :  { %v3392_v41 = vpop.eup %3391 }
 0x88a   :  { %v1230_v42 = vmul.f32 %v3392_v41, %v1214_v28  ;;  %v1245_v46 = vadd.f32 %v2826_v44, %v1237_v43  ;;  %v2840_v43 = vld [vmem:[%s4238_s2 + $0x1] ss:$0 sm:$0xff]  ;;  %s2787_s2 = sshll.u32 %s3546_s1, 4  ;;  %s2788_s2 = int_to_ptr.vmem [resolvable:$true] %s2787_s2 }
 0x88b   :  { %p3510_p2 = scmp.lt.s32.totalorder %s2788_s2, %s2788_s2 }
 0x88c   :  { %v1238_v45 = vmul.f32 %v2825_v40, %v1230_v42 }
 0x88e   :  { %v1246_v49 = vadd.f32 %v2826_v44, %v1238_v45 }
 0x890   :  { %v1247_v50 = vpack.c.bf16 %v1246_v49, %v1245_v46 }
 0x892   :  { %3110 = vmatmul.mubr.msk.bf16.vlgmr.msra.gmra.mxu0 %vm94_vm0, %v1247_v50 }
 0x893   :  { %3129 = vmatprep.mubr.msk.bf16.mxu0 %vm3539_vm1, %v3538_v15  ;;  %3126 = vmatpush3.bf16.msra.mxu0 %v3343_v1 }
 0x894   :  { %3127 = vmatprep.subr.bf16.mxu0 %v3538_v15 }
 0x897   :  { %3128 = vmatpush3.bf16.msra.mxu0 %v3344_v31 }
 0x898   :  { %3133 = vmatprep.subr.bf16.mxu0 %v3538_v15 }
 0x952   :  { %v1308_v60 = vpop.f32.mrf.mxu0 }
 0x953   :  { %v1309_v61 = vadd.f32 %v2827_v57, %v1308_v60 }
 0x954   :  { %v3111_v62 = vpop.f32.mrf.mxu0 }
 0x955   :  { %v1317_v63 = vmul.f32 0.70710677, %v1309_v61  ;;  %v1315_v39 = vmul.f32 0.5, %v1309_v61 }
 0x956   :  { %v1311_v58 = vpop.f32.mrf.mxu0 }
 0x957   :  { %3393 = verf.f32 %v1317_v63  ;;  %v1312_v2 = vadd.f32 %v2827_v57, %v1311_v58 }
 0x958   :  { %v3112_v3 = vpop.f32.mrf.mxu0 }
 0x959   :  { %v1318_v4 = vmul.f32 0.70710677, %v1312_v2  ;;  %v1316_v48 = vmul.f32 0.5, %v1312_v2 }
 0x95b   :  { %3395 = verf.f32 %v1318_v4 }
 0x964   :  { %v3394_v5 = vpop.eup %3393 }
 0x965   :  { %v1321_v6 = vadd.f32 1.0, %v3394_v5 }
 0x967   :  { %v1323_v8 = vmul.f32 %v1321_v6, %v1315_v39 }
 0x968   :  { %v3396_v47 = vpop.eup %3395 }
 0x969   :  { %v1322_v7 = vadd.f32 1.0, %v3396_v47 }
 0x96b   :  { %v1324_v9 = vmul.f32 %v1322_v7, %v1316_v48 }
 0x96d   :  { %v1325_v10 = vpack.c.bf16 %v1324_v9, %v1323_v8 }
 0x96f   :  { %3122 = vmatmul.mubr.msk.bf16.vlgmr.msra.gmra.mxu1 %vm1365_vm6, %v1325_v10 }
 0x970   :  { %3141 = vmatprep.mubr.msk.bf16.mxu1 %vm3539_vm1, %v3538_v15 }
 0xa2f   :  { %v1403_v12 = vpop.f32.mrf.mxu1 }
 0xa30   :  { %v1404_v13 = vadd.f32 %v2831_v11, %v1403_v12 }
 0xa31   :  { %v3123_v14 = vpop.f32.mrf.mxu1 }
 0xa32   :  { %v3933_v16 = vadd.f32 %v1404_v13, %v3883_v17 }
 0xa33   :  { %v1406_v18 = vpop.f32.mrf.mxu1 }
 0xa34   :  { %v1407_v19 = vadd.f32 %v2831_v11, %v1406_v18  ;;  %v1416_v20 = vsel %vm94_vm0, %v3933_v16, 0.0 }
 0xa35   :  { %1417 = vadd.xlane.f32.xlu0 %v1416_v20  ;;  %v3124_v53 = vpop.f32.mrf.mxu1 }
 0xa36   :  { %v3938_v22 = vadd.f32 %v1407_v19, %v3888_v21 }
 0xa38   :  { %v1419_v23 = vsel %vm94_vm0, %v3938_v22, 0.0 }
 0xa39   :  { %1420 = vadd.xlane.f32.xlu1 %v1419_v23 }
 0xabe   :  { %v1418_v24 = vpop.xlane.xlu0 %1417 }
 0xabf   :  { %v1422_v25 = vmul.f32 0.03125, %v1418_v24 }
 0xac1   :  { %v1424_v0 = vsub.f32 %v3933_v16, %v1422_v25 }
 0xac2   :  { %v1421_v17 = vpop.xlane.xlu1 %1420 }
 0xac3   :  { %v1423_v26 = vmul.f32 0.03125, %v1421_v17  ;;  %v1426_v27 = vmul.f32 %v1424_v0, %v1424_v0 }
 0xac5   :  { %v1425_v28 = vsub.f32 %v3938_v22, %v1423_v26  ;;  %v1428_v29 = vsel %vm94_vm0, %v1426_v27, 0.0 }
 0xac6   :  { %1429 = vadd.xlane.f32.xlu0 %v1428_v29 }
 0xac7   :  { %v1427_v30 = vmul.f32 %v1425_v28, %v1425_v28 }
 0xac9   :  { %v1431_v21 = vsel %vm94_vm0, %v1427_v30, 0.0 }
 0xaca   :  { %1432 = vadd.xlane.f32.xlu1 %v1431_v21 }
 0xb4f   :  { %v1430_v32 = vpop.xlane.xlu0 %1429 }
 0xb50   :  { %v1434_v33 = vmul.f32 0.03125, %v1430_v32 }
 0xb52   :  { %v1436_v35 = vadd.f32 1e-05, %v1434_v33 }
 0xb53   :  { %v1433_v36 = vpop.xlane.xlu1 %1432 }
 0xb54   :  { %3397 = vrsqrt.f32 %v1436_v35  ;;  %v1435_v37 = vmul.f32 0.03125, %v1433_v36 }
 0xb56   :  { %v1437_v38 = vadd.f32 1e-05, %v1435_v37 }
 0xb58   :  { %3399 = vrsqrt.f32 %v1437_v38 }
 0xb61   :  { %v3398_v52 = vpop.eup %3397 }
 0xb62   :  { %v1440_v34 = vmul.f32 %v3398_v52, %v1424_v0 }
 0xb64   :  { %v1448_v42 = vmul.f32 %v2839_v59, %v1440_v34 }
 0xb65   :  { %v3400_v40 = vpop.eup %3399 }
 0xb66   :  { %v1441_v41 = vmul.f32 %v3400_v40, %v1425_v28  ;;  %v1456_v45 = vadd.f32 %v2840_v43, %v1448_v42 }
 0xb68   :  { %v1449_v44 = vmul.f32 %v2839_v59, %v1441_v41 }
 0xb6a   :  { %v1457_v46 = vadd.f32 %v2840_v43, %v1449_v44 }
 0xb6c   :  { %v1458_v49 = vpack.c.bf16 %v1457_v46, %v1456_v45 }
 0xb6e   :  { %3130 = vmatmul.mubr.msk.bf16.vlgmr.msra.gmra.mxu0 %vm94_vm0, %v1458_v49 }
 0xb6f   :  { %3135 = vmatprep.mubr.msk.bf16.mxu0 %vm3539_vm1, %v3538_v15 }
 0xc2e   :  { %v1513_v50 = vpop.f32.mrf.mxu0 }
 0xc2f   :  { %v1540_v60 = vpack.c.bf16 %v1513_v50, %v1513_v50 }
 0xc30   :  { %v3131_v51 = vpop.f32.mrf.mxu0 }
 0xc32   :  { %v1516_v54 = vpop.f32.mrf.mxu0 }
 0xc33   :  { %v3308_v55 = vpack.i.bf16 %v1516_v54, %v1513_v50  ;;  %v3965_v57 = vpack.c.bf16 %v1516_v54, %v1516_v54 }
 0xc34   :  { %v3132_v56 = vpop.f32.mrf.mxu0 }
 0xc35   :  { %3309 = vrot.lane.b32.xlu1 %v3308_v55, %s3540_s22  ;;  %3304 = vrot.lane.b32.xlu0 %v3308_v55, %s3541_s25  ;;  %s3505_s22 = scalar_lea.vmem %s2788_s2, 256 }
 0xc36   :  { %p3506_p1 = scmp.ne.s32.totalorder %s2788_s2, %s3505_s22  ;;  %p3511_p3 = scmp.lt.s32.totalorder %s3505_s22, %s3505_s22 }
 0xc38   :  { %p3512_p4 = por %p3511_p3, %p3510_p2 }
 0xc39   :  { %3314 = vrot.lane.b32.xlu1 %v3308_v55, %s3542_s26  ;;  %1598 = vrot.lane.b32.xlu0 %v3965_v57, %s3543_s9 }
 0xc3a   :  { %p3513_p5 = pnand %p3512_p4, %p3506_p1 }
 0xc3d   :  { %1549 = vrot.lane.b32.xlu1 %v1540_v60, %s3543_s9 }
 0xca7   :  { %v3310_v61 = vpop.permute.xlu1 %3309  ;;  %v3305_v62 = vpop.permute.xlu0 %3304 }
 0xca8   :  { %v3307_v63 = vunpack.i.h.bf16 %v3305_v62  ;;  %v3306_v58 = vunpack.i.l.bf16 %v3305_v62  ;;  %v3312_v2 = vunpack.i.h.bf16 %v3310_v61  ;;  %v3311_v3 = vunpack.i.l.bf16 %v3310_v61 }
 0xcaa   :  { %v3971_v4 = vpack.c.bf16 %v3307_v63, %v3307_v63  ;;  %v3973_v5 = vpack.c.bf16 %v3306_v58, %v3306_v58  ;;  %v3980_v48 = vpack.c.bf16 %v3312_v2, %v3312_v2  ;;  %v3982_v7 = vpack.c.bf16 %v3311_v3, %v3311_v3 }
 0xcab   :  { %v3315_v6 = vpop.permute.xlu1 %3314  ;;  %v1599_v47 = vpop.permute.xlu0 %1598 }
 0xcac   :  { %v1604_v39 = vsel %vm230_vm2, %v1599_v47, 0  ;;  %1647 = vrot.lane.b32.xlu1 %v3973_v5, %s3543_s9  ;;  %1696 = vrot.lane.b32.xlu0 %v3971_v4, %s3543_s9  ;;  %v3317_v8 = vunpack.i.h.bf16 %v3315_v6  ;;  %v3316_v9 = vunpack.i.l.bf16 %v3315_v6 }
 0xcad   :  { %3140 = vmatpush3.bf16.xpose.msra.mxu1 %v1604_v39 }
 0xcae   :  { %3151 = vmatprep.subr.bf16.mxu1 %v3538_v15  ;;  %v3990_v12 = vpack.c.bf16 %v3317_v8, %v3317_v8  ;;  %v3992_v13 = vpack.c.bf16 %v3316_v9, %v3316_v9 }
 0xcaf   :  { %v1550_v10 = vpop.permute.xlu1 %1549 }
 0xcb0   :  { %v1555_v11 = vsel %vm230_vm2, %v1550_v10, 0  ;;  %1745 = vrot.lane.b32.xlu1 %v3982_v7, %s3543_s9  ;;  %1794 = vrot.lane.b32.xlu0 %v3980_v48, %s3543_s9 }
 0xcb1   :  { %3134 = vmatpush3.bf16.xpose.msra.mxu0 %v1555_v11 }
 0xcb2   :  { %3145 = vmatprep.subr.bf16.mxu0 %v3538_v15 }
 0xcb4   :  { %1843 = vrot.lane.b32.xlu1 %v3992_v13, %s3543_s9  ;;  %1892 = vrot.lane.b32.xlu0 %v3990_v12, %s3543_s9 }
 0xcb5   :  { %3142 = vmatmul.mubr.msk.bf16.vlgmr.msra.gmra.mxu1 %vm230_vm2, %v3965_v57 }
 0xcb6   :  { %3153 = vmatprep.mubr.msk.bf16.mxu1 %vm3539_vm1, %v3538_v15 }
 0xcb8   :  { %3136 = vmatmul.mubr.msk.bf16.vlgmr.msra.gmra.mxu0 %vm230_vm2, %v1540_v60  ;;  %2036 = vrot.lane.b32.xlu1 %v1540_v60, %s3544_s27 }
 0xcb9   :  { %3147 = vmatprep.mubr.msk.bf16.mxu0 %vm3539_vm1, %v3538_v15 }
 0xd1e   :  { %v1648_v14 = vpop.permute.xlu1 %1647  ;;  %v1697_v18 = vpop.permute.xlu0 %1696 }
 0xd1f   :  { %v1653_v19 = vsel %vm230_vm2, %v1648_v14, 0  ;;  %v1702_v20 = vsel %vm230_vm2, %v1697_v18, 0 }
 0xd20   :  { %3146 = vmatpush3.bf16.xpose.msra.mxu0 %v1653_v19  ;;  %3152 = vmatpush3.bf16.xpose.msra.mxu1 %v1702_v20 }
 0xd21   :  { %3157 = vmatprep.subr.bf16.mxu0 %v3538_v15  ;;  %3163 = vmatprep.subr.bf16.mxu1 %v3538_v15 }
 0xd22   :  { %v1746_v53 = vpop.permute.xlu1 %1745  ;;  %v1795_v23 = vpop.permute.xlu0 %1794 }
 0xd23   :  { %v1751_v24 = vsel %vm230_vm2, %v1746_v53, 0  ;;  %v1800_v25 = vsel %vm230_vm2, %v1795_v23, 0 }
 0xd26   :  { %v1844_v0 = vpop.permute.xlu1 %1843  ;;  %v1893_v17 = vpop.permute.xlu0 %1892 }
 0xd27   :  { %3148 = vmatmul.mubr.msk.bf16.vlgmr.msra.gmra.mxu0 %vm230_vm2, %v3973_v5  ;;  %3154 = vmatmul.mubr.msk.bf16.vlgmr.msra.gmra.mxu1 %vm230_vm2, %v3971_v4  ;;  %v1849_v26 = vsel %vm230_vm2, %v1844_v0, 0  ;;  %v1898_v27 = vsel %vm230_vm2, %v1893_v17, 0 }
 0xd28   :  { %3158 = vmatpush3.bf16.xpose.msra.mxu0 %v1751_v24  ;;  %3164 = vmatpush3.bf16.xpose.msra.mxu1 %v1800_v25 }
 0xd29   :  { %3159 = vmatprep.mubr.msk.bf16.mxu0 %vm3539_vm1, %v3538_v15  ;;  %3165 = vmatprep.mubr.msk.bf16.mxu1 %vm3539_vm1, %v3538_v15 }
 0xd2a   :  { %3169 = vmatprep.subr.bf16.mxu0 %v3538_v15  ;;  %3175 = vmatprep.subr.bf16.mxu1 %v3538_v15  ;;  %v2037_v28 = vpop.permute.xlu1 %2036 }
 0xd2b   :  { %v2042_v29 = vsel %vm721_vm3, %v2037_v28, 0 }
 0xd2f   :  { %3160 = vmatmul.mubr.msk.bf16.vlgmr.msra.gmra.mxu0 %vm230_vm2, %v3982_v7  ;;  %3166 = vmatmul.mubr.msk.bf16.vlgmr.msra.gmra.mxu1 %vm230_vm2, %v3980_v48 }
 0xd30   :  { %3170 = vmatpush3.bf16.xpose.msra.mxu0 %v1849_v26  ;;  %3176 = vmatpush3.bf16.xpose.msra.mxu1 %v1898_v27 }
 0xd31   :  { %3171 = vmatprep.mubr.msk.bf16.mxu0 %vm3539_vm1, %v3538_v15  ;;  %3177 = vmatprep.mubr.msk.bf16.mxu1 %vm3539_vm1, %v3538_v15 }
 0xd32   :  { %3181 = vmatprep.subr.bf16.mxu0 %v3538_v15  ;;  %3187 = vmatprep.subr.bf16.mxu1 %v3538_v15 }
 0xd37   :  { %3172 = vmatmul.mubr.msk.bf16.vlgmr.msra.gmra.mxu0 %vm230_vm2, %v3992_v13  ;;  %3178 = vmatmul.mubr.msk.bf16.vlgmr.msra.gmra.mxu1 %vm230_vm2, %v3990_v12 }
 0xd38   :  { %3182 = vmatpush3.bf16.msra.mxu0 %v2042_v29  ;;  %3189 = vmatprep.mubr.msk.bf16.mxu1 %vm3539_vm1, %v3538_v15 }
 0xd39   :  { %3183 = vmatprep.mubr.msk.bf16.mxu0 %vm3539_vm1, %v3538_v15  ;;  %3193 = vmatprep.subr.bf16.mxu0 %v3538_v15 }
 0xd75   :  { %v1640_v30 = vpop.f32.mrf.mxu1 }
 0xd76   :  { %v1943_v21 = vsel %vm230_vm2, %v1640_v30, -inf }
 0xd77   :  { %1944 = vmax.xlane.f32.xlu0 %v1943_v21  ;;  %v3143_v1 = vpop.f32.mrf.mxu1 }
 0xd78   :  { %v1591_v31 = vpop.f32.mrf.mxu0 }
 0xd79   :  { %v1643_v32 = vpop.f32.mrf.mxu1  ;;  %v1940_v33 = vsel %vm230_vm2, %v1591_v31, -inf }
 0xd7a   :  { %1941 = vmax.xlane.f32.xlu1 %v1940_v33  ;;  %v3137_v35 = vpop.f32.mrf.mxu0 }
 0xd7b   :  { %v3144_v36 = vpop.f32.mrf.mxu1 }
 0xd7c   :  { %v1594_v37 = vpop.f32.mrf.mxu0 }
 0xd7e   :  { %v3138_v38 = vpop.f32.mrf.mxu0 }
 0xde7   :  { %v1689_v52 = vpop.f32.mrf.mxu0  ;;  %v1738_v34 = vpop.f32.mrf.mxu1 }
 0xde8   :  { %v1946_v59 = vsel %vm230_vm2, %v1689_v52, -inf  ;;  %v1949_v44 = vsel %vm230_vm2, %v1738_v34, -inf }
 0xde9   :  { %v3149_v40 = vpop.f32.mrf.mxu0  ;;  %1947 = vmax.xlane.f32.xlu0 %v1946_v59  ;;  %v3155_v41 = vpop.f32.mrf.mxu1 }
 0xdeb   :  { %v1692_v42 = vpop.f32.mrf.mxu0  ;;  %v1741_v43 = vpop.f32.mrf.mxu1 }
 0xded   :  { %v3150_v45 = vpop.f32.mrf.mxu0  ;;  %1950 = vmax.xlane.f32.xlu0 %v1949_v44  ;;  %v3156_v46 = vpop.f32.mrf.mxu1 }
 0xdef   :  { %v1787_v49 = vpop.f32.mrf.mxu0  ;;  %v4049_v50 = vpop.f32.mrf.mxu1 }
 0xdf0   :  { %v1952_v51 = vsel %vm230_vm2, %v1787_v49, -inf  ;;  %v1955_v54 = vsel %vm230_vm2, %v4049_v50, -inf }
 0xdf1   :  { %1953 = vmax.xlane.f32.xlu1 %v1952_v51  ;;  %v3161_v55 = vpop.f32.mrf.mxu0  ;;  %1956 = vmax.xlane.f32.xlu0 %v1955_v54  ;;  %v3167_v56 = vpop.f32.mrf.mxu1 }
 0xdf3   :  { %v1790_v60 = vpop.f32.mrf.mxu0  ;;  %v1839_v61 = vpop.f32.mrf.mxu1 }
 0xdf5   :  { %v3162_v62 = vpop.f32.mrf.mxu0  ;;  %v3168_v63 = vpop.f32.mrf.mxu1 }
 0xdf7   :  { %v1885_v58 = vpop.f32.mrf.mxu0  ;;  %v4054_v2 = vpop.f32.mrf.mxu1 }
 0xdf8   :  { %v1958_v3 = vsel %vm230_vm2, %v1885_v58, -inf  ;;  %v1961_v6 = vsel %vm230_vm2, %v4054_v2, -inf }
 0xdf9   :  { %1959 = vmax.xlane.f32.xlu1 %v1958_v3  ;;  %v3173_v47 = vpop.f32.mrf.mxu0  ;;  %1962 = vmax.xlane.f32.xlu0 %v1961_v6  ;;  %v3179_v39 = vpop.f32.mrf.mxu1 }
 0xdfb   :  { %v1888_v8 = vpop.f32.mrf.mxu0  ;;  %v1937_v9 = vpop.f32.mrf.mxu1 }
 0xdfd   :  { %v3174_v10 = vpop.f32.mrf.mxu0  ;;  %v3180_v11 = vpop.f32.mrf.mxu1 }
 0xe00   :  { %v1945_v14 = vpop.xlane.xlu0 %1944 }
 0xe01   :  { %v1965_v18 = vsub.f32 %v1640_v30, %v1945_v14 }
 0xe03   :  { %v1942_v19 = vpop.xlane.xlu1 %1941  ;;  %v1974_v20 = vmul.f32 1.442695, %v1965_v18 }
 0xe04   :  { %v1964_v53 = vsub.f32 %v1591_v31, %v1942_v19 }
 0xe05   :  { %3401 = vpow2.f32 %v1974_v20 }
 0xe06   :  { %v1972_v23 = vmul.f32 1.442695, %v1964_v53 }
 0xe08   :  { %3403 = vpow2.f32 %v1972_v23 }
 0xe0a   :  { %2132 = vrot.lane.b32.xlu1 %v3973_v5, %s3544_s27 }
 0xe0e   :  { %2180 = vrot.lane.b32.xlu1 %v3971_v4, %s3544_s27 }
 0xe0f   :  { %2084 = vrot.lane.b32.xlu0 %v3965_v57, %s3544_s27 }
 0xe12   :  { %v3402_v24 = vpop.eup %3401 }
 0xe13   :  { %v1991_v25 = vsel %vm230_vm2, %v3402_v24, 0.0 }
 0xe15   :  { %v4066_v0 = vpop.eup %3403 }
 0xe16   :  { %v1988_v4 = vsel %vm230_vm2, %v4066_v0, 0.0 }
 0xe2e   :  { %1992 = vadd.xlane.f32.xlu0 %v1991_v25 }
 0xe32   :  { %1989 = vadd.xlane.f32.xlu1 %v1988_v4 }
 0xe43   :  { %2228 = vrot.lane.b32.xlu1 %v3982_v7, %s3544_s27 }
 0xe72   :  { %v1948_v57 = vpop.xlane.xlu0 %1947 }
 0xe73   :  { %v1966_v5 = vsub.f32 %v1689_v52, %v1948_v57 }
 0xe75   :  { %v1976_v17 = vmul.f32 1.442695, %v1966_v5 }
 0xe76   :  { %v1951_v26 = vpop.xlane.xlu0 %1950 }
 0xe77   :  { %3405 = vpow2.f32 %v1976_v17  ;;  %v1967_v27 = vsub.f32 %v1738_v34, %v1951_v26 }
 0xe79   :  { %v1978_v28 = vmul.f32 1.442695, %v1967_v27 }
 0xe7a   :  { %v1954_v29 = vpop.xlane.xlu1 %1953  ;;  %v1957_v1 = vpop.xlane.xlu0 %1956 }
 0xe7b   :  { %3407 = vpow2.f32 %v1978_v28  ;;  %v1968_v30 = vsub.f32 %v1787_v49, %v1954_v29  ;;  %v1969_v43 = vsub.f32 %v4049_v50, %v1957_v1 }
 0xe7d   :  { %v1980_v21 = vmul.f32 1.442695, %v1968_v30  ;;  %v1982_v44 = vmul.f32 1.442695, %v1969_v43 }
 0xe7f   :  { %3409 = vpow2.f32 %v1980_v21 }
 0xe82   :  { %v1960_v31 = vpop.xlane.xlu1 %1959  ;;  %v1963_v32 = vpop.xlane.xlu0 %1962 }
 0xe83   :  { %v1970_v33 = vsub.f32 %v1885_v58, %v1960_v31  ;;  %v1971_v45 = vsub.f32 %v4054_v2, %v1963_v32 }
 0xe84   :  { %v4072_v35 = vpop.eup %3405 }
 0xe85   :  { %v1984_v36 = vmul.f32 1.442695, %v1970_v33  ;;  %v1994_v7 = vsel %vm230_vm2, %v4072_v35, 0.0  ;;  %v1986_v46 = vmul.f32 1.442695, %v1971_v45 }
 0xe86   :  { %1995 = vadd.xlane.f32.xlu1 %v1994_v7  ;;  %v2085_v37 = vpop.permute.xlu0 %2084  ;;  %v2133_v49 = vpop.permute.xlu1 %2132 }
 0xe87   :  { %3411 = vpow2.f32 %v1984_v36  ;;  %v2090_v38 = vsel %vm721_vm3, %v2085_v37, 0  ;;  %v2138_v6 = vsel %vm721_vm3, %v2133_v49, 0 }
 0xe88   :  { %v4077_v52 = vpop.eup %3407  ;;  %3188 = vmatpush3.bf16.msra.mxu1 %v2090_v38  ;;  %3413 = vpow2.f32 %v1982_v44 }
 0xe89   :  { %v1997_v34 = vsel %vm230_vm2, %v4077_v52, 0.0  ;;  %3199 = vmatprep.subr.bf16.mxu1 %v3538_v15  ;;  %3415 = vpow2.f32 %v1986_v46 }
 0xe8a   :  { %1998 = vadd.xlane.f32.xlu0 %v1997_v34  ;;  %v2181_v51 = vpop.permute.xlu1 %2180 }
 0xe8b   :  { %v2186_v58 = vsel %vm721_vm3, %v2181_v51, 0 }
 0xe8c   :  { %v4082_v59 = vpop.eup %3409 }
 0xe8d   :  { %v2000_v40 = vsel %vm230_vm2, %v4082_v59, 0.0 }
 0xe8e   :  { %2001 = vadd.xlane.f32.xlu1 %v2000_v40 }
 0xe94   :  { %v4086_v41 = vpop.eup %3411 }
 0xe95   :  { %v2006_v42 = vsel %vm230_vm2, %v4086_v41, 0.0  ;;  %v4096_v55 = vpop.eup %3413 }
 0xe96   :  { %2007 = vadd.xlane.f32.xlu1 %v2006_v42  ;;  %v4100_v50 = vpop.eup %3415 }
 0xea0   :  { %2276 = vrot.lane.b32.xlu0 %v3980_v48, %s3544_s27  ;;  %v2003_v48 = vsel %vm230_vm2, %v4096_v55, 0.0 }
 0xea7   :  { %2324 = vrot.lane.b32.xlu1 %v3992_v13, %s3544_s27  ;;  %v2009_v13 = vsel %vm230_vm2, %v4100_v50, 0.0 }
 0xeb7   :  { %v1993_v54 = vpop.xlane.xlu0 %1992 }
 0xeb8   :  { %3417 = vrcp.f32 %v1993_v54 }
 0xebb   :  { %v1990_v56 = vpop.xlane.xlu1 %1989 }
 0xebc   :  { %3419 = vrcp.f32 %v1990_v56 }
 0xebf   :  { %2004 = vadd.xlane.f32.xlu0 %v2003_v48  ;;  %v2229_v47 = vpop.permute.xlu1 %2228 }
 0xec0   :  { %v2234_v20 = vsel %vm721_vm3, %v2229_v47, 0 }
 0xec3   :  { %2010 = vadd.xlane.f32.xlu0 %v2009_v13 }
 0xec5   :  { %v3418_v60 = vpop.eup %3417 }
 0xec6   :  { %v2021_v61 = vmul.f32 %v3418_v60, %v3402_v24 }
 0xec8   :  { %v2029_v62 = vpack.c.bf16 %v2021_v61, %v2021_v61 }
 0xec9   :  { %v3420_v63 = vpop.eup %3419 }
 0xeca   :  { %3190 = vmatmul.mubr.msk.bf16.vlgmr.msra.gmra.mxu1 %vm230_vm2, %v2029_v62  ;;  %v2020_v2 = vmul.f32 %v3420_v63, %v4066_v0 }
 0xecb   :  { %3200 = vmatpush3.bf16.msra.mxu1 %v2186_v58  ;;  %3201 = vmatprep.mubr.msk.bf16.mxu1 %vm3539_vm1, %v3538_v15  ;;  %v3345_v58 = vld [vmem:[%s4240_s4 + $0x18] sm:$0xff]  }
 0xecc   :  { %v2028_v3 = vpack.c.bf16 %v2020_v2, %v2020_v2  ;;  %3211 = vmatprep.subr.bf16.mxu1 %v3538_v15 }
 0xece   :  { %3184 = vmatmul.mubr.msk.bf16.vlgmr.msra.gmra.mxu0 %vm230_vm2, %v2028_v3  ;;  %v3346_v3 = vld [vmem:[%s4240_s4 + $0x10] sm:$0xff]  }
 0xecf   :  { %3194 = vmatpush3.bf16.msra.mxu0 %v2138_v6  ;;  %3195 = vmatprep.mubr.msk.bf16.mxu0 %vm3539_vm1, %v3538_v15 }
 0xed0   :  { %3205 = vmatprep.subr.bf16.mxu0 %v3538_v15 }
 0xed9   :  { %2372 = vrot.lane.b32.xlu0 %v3990_v12, %s3544_s27 }
 0xf0f   :  { %v1996_v39 = vpop.xlane.xlu1 %1995 }
 0xf10   :  { %3421 = vrcp.f32 %v1996_v39 }
 0xf13   :  { %v1999_v8 = vpop.xlane.xlu0 %1998 }
 0xf14   :  { %3423 = vrcp.f32 %v1999_v8 }
 0xf17   :  { %v2002_v9 = vpop.xlane.xlu1 %2001  ;;  %v2277_v53 = vpop.permute.xlu0 %2276 }
 0xf18   :  { %3425 = vrcp.f32 %v2002_v9  ;;  %v2282_v25 = vsel %vm721_vm3, %v2277_v53, 0 }
 0xf1d   :  { %v3422_v10 = vpop.eup %3421 }
 0xf1e   :  { %v2022_v11 = vmul.f32 %v3422_v10, %v4072_v35 }
 0xf1f   :  { %v2008_v14 = vpop.xlane.xlu1 %2007 }
 0xf20   :  { %3427 = vrcp.f32 %v2008_v14  ;;  %v2030_v18 = vpack.c.bf16 %v2022_v11, %v2022_v11 }
 0xf21   :  { %v3424_v19 = vpop.eup %3423 }
 0xf22   :  { %3196 = vmatmul.mubr.msk.bf16.vlgmr.msra.gmra.mxu0 %vm230_vm2, %v2030_v18  ;;  %v2023_v12 = vmul.f32 %v3424_v19, %v4077_v52 }
 0xf23   :  { %3206 = vmatpush3.bf16.msra.mxu0 %v2234_v20  ;;  %3207 = vmatprep.mubr.msk.bf16.mxu0 %vm3539_vm1, %v3538_v15  ;;  %v2325_v4 = vpop.permute.xlu1 %2324 }
 0xf24   :  { %v2031_v23 = vpack.c.bf16 %v2023_v12, %v2023_v12  ;;  %3217 = vmatprep.subr.bf16.mxu0 %v3538_v15  ;;  %v2330_v5 = vsel %vm721_vm3, %v2325_v4, 0 }
 0xf25   :  { %v3426_v24 = vpop.eup %3425 }
 0xf26   :  { %3202 = vmatmul.mubr.msk.bf16.vlgmr.msra.gmra.mxu1 %vm230_vm2, %v2031_v23  ;;  %v2024_v0 = vmul.f32 %v3426_v24, %v4082_v59 }
 0xf27   :  { %3212 = vmatpush3.bf16.msra.mxu1 %v2282_v25  ;;  %3213 = vmatprep.mubr.msk.bf16.mxu1 %vm3539_vm1, %v3538_v15 }
 0xf28   :  { %v2032_v57 = vpack.c.bf16 %v2024_v0, %v2024_v0  ;;  %3223 = vmatprep.subr.bf16.mxu1 %v3538_v15 }
 0xf2a   :  { %3208 = vmatmul.mubr.msk.bf16.vlgmr.msra.gmra.mxu0 %vm230_vm2, %v2032_v57 }
 0xf2b   :  { %3218 = vmatpush3.bf16.msra.mxu0 %v2330_v5  ;;  %3219 = vmatprep.mubr.msk.bf16.mxu0 %vm3539_vm1, %v3538_v15 }
 0xf2c   :  { %3229 = vmatprep.subr.bf16.mxu0 %v3538_v15 }
 0xf2d   :  { %v3428_v17 = vpop.eup %3427 }
 0xf2e   :  { %v2026_v26 = vmul.f32 %v3428_v17, %v4086_v41 }
 0xf30   :  { %v2034_v27 = vpack.c.bf16 %v2026_v26, %v2026_v26 }
 0xf32   :  { %3220 = vmatmul.mubr.msk.bf16.vlgmr.msra.gmra.mxu0 %vm230_vm2, %v2034_v27 }
 0xf33   :  { %3233 = vmatprep.mubr.msk.bf16.mxu0 %vm3539_vm1, %v3538_v15  ;;  %3230 = vmatpush3.bf16.msra.mxu0 %v3345_v58  ;;  %v2876_v58 = vld [vmem:[%s4243_s7 + $0x1] ss:$0 sm:$0xff] }
 0xf34   :  { %3231 = vmatprep.subr.bf16.mxu0 %v3538_v15 }
 0xf37   :  { %3232 = vmatpush3.bf16.msra.mxu0 %v3346_v3 }
 0xf38   :  { %3245 = vmatprep.subr.bf16.mxu0 %v3538_v15 }
 0xf48   :  { %v2005_v28 = vpop.xlane.xlu0 %2004 }
 0xf49   :  { %3429 = vrcp.f32 %v2005_v28 }
 0xf4c   :  { %v2011_v29 = vpop.xlane.xlu0 %2010 }
 0xf4d   :  { %3431 = vrcp.f32 %v2011_v29 }
 0xf50   :  { %v2373_v1 = vpop.permute.xlu0 %2372 }
 0xf51   :  { %v2378_v33 = vsel %vm721_vm3, %v2373_v1, 0 }
 0xf56   :  { %v3430_v30 = vpop.eup %3429 }
 0xf57   :  { %v2025_v21 = vmul.f32 %v3430_v30, %v4096_v55  ;;  %v2869_v30 = vld [vmem:[%s4241_s5 + $0x1] ss:$0 sm:$0xff] }
 0xf59   :  { %v2033_v31 = vpack.c.bf16 %v2025_v21, %v2025_v21 }
 0xf5a   :  { %v3432_v32 = vpop.eup %3431 }
 0xf5b   :  { %3214 = vmatmul.mubr.msk.bf16.vlgmr.msra.gmra.mxu1 %vm230_vm2, %v2033_v31  ;;  %v2027_v35 = vmul.f32 %v3432_v32, %v4100_v50 }
 0xf5c   :  { %3224 = vmatpush3.bf16.msra.mxu1 %v2378_v33  ;;  %3225 = vmatprep.mubr.msk.bf16.mxu1 %vm3539_vm1, %v3538_v15 }
 0xf5d   :  { %3237 = vmatprep.subr.bf16.mxu1 %v3538_v15  ;;  %v2035_v36 = vpack.c.bf16 %v2027_v35, %v2027_v35 }
 0xf63   :  { %3226 = vmatmul.mubr.msk.bf16.vlgmr.msra.gmra.mxu1 %vm230_vm2, %v2035_v36 }
 0xf64   :  { %3241 = vmatprep.mubr.msk.bf16.mxu1 %vm3539_vm1, %v3538_v15 }
 0xf8a   :  { %v2126_v7 = vpop.f32.mrf.mxu1 }
 0xf8c   :  { %v3191_v37 = vpop.f32.mrf.mxu1 }
 0xf8e   :  { %v2078_v38 = vpop.f32.mrf.mxu0  ;;  %v2129_v52 = vpop.f32.mrf.mxu1 }
 0xf90   :  { %v3185_v34 = vpop.f32.mrf.mxu0  ;;  %v3192_v59 = vpop.f32.mrf.mxu1 }
 0xf92   :  { %v2081_v40 = vpop.f32.mrf.mxu0 }
 0xf94   :  { %v3186_v41 = vpop.f32.mrf.mxu0 }
 0xfe2   :  { %v2174_v42 = vpop.f32.mrf.mxu0 }
 0xfe4   :  { %v3197_v43 = vpop.f32.mrf.mxu0 }
 0xfe6   :  { %v2177_v44 = vpop.f32.mrf.mxu0  ;;  %v2222_v45 = vpop.f32.mrf.mxu1 }
 0xfe7   :  { %v3318_v46 = vpack.i.bf16 %v2222_v45, %v2174_v42  ;;  %v3347_v45 = vld [vmem:[%s4244_s8 + $0x18] sm:$0xff]  }
 0xfe8   :  { %v3198_v49 = vpop.f32.mrf.mxu0  ;;  %v3203_v51 = vpop.f32.mrf.mxu1  ;;  %3238 = vmatpush3.bf16.msra.mxu1 %v3347_v45 }
 0xfe9   :  { %3319 = vrot.lane.b32.xlu1 %v3318_v46, %s3536_s24  ;;  %v3348_v46 = vld [vmem:[%s4244_s8 + $0x10] sm:$0xff]   ;;  %3239 = vmatprep.subr.bf16.mxu1 %v3538_v15 }
 0xfea   :  { %v2225_v54 = vpop.f32.mrf.mxu1  ;;  %v2270_v55 = vpop.f32.mrf.mxu0 }
 0xfec   :  { %v3204_v56 = vpop.f32.mrf.mxu1  ;;  %v3209_v48 = vpop.f32.mrf.mxu0  ;;  %3240 = vmatpush3.bf16.msra.mxu1 %v3348_v46 }
 0xfee   :  { %v2273_v50 = vpop.f32.mrf.mxu0 }
 0xff0   :  { %v3210_v13 = vpop.f32.mrf.mxu0 }
 0xff2   :  { %v2366_v60 = vpop.f32.mrf.mxu0 }
 0xff4   :  { %v3221_v61 = vpop.f32.mrf.mxu0 }
 0xff6   :  { %v2369_v62 = vpop.f32.mrf.mxu0 }
 0xff8   :  { %v3222_v63 = vpop.f32.mrf.mxu0 }
0x101b   :  { %v2318_v2 = vpop.f32.mrf.mxu1 }
0x101c   :  { %v3323_v6 = vpack.i.bf16 %v2318_v2, %v2270_v55 }
0x101d   :  { %v3215_v47 = vpop.f32.mrf.mxu1 }
0x101e   :  { %3324 = vrot.lane.b32.xlu0 %v3323_v6, %s3532_s16 }
0x101f   :  { %v2321_v39 = vpop.f32.mrf.mxu1 }
0x1020   :  { %v3349_v39 = vld [vmem:[%s4246_s10 + $0x38] sm:$0xff]  }
0x1021   :  { %v3216_v8 = vpop.f32.mrf.mxu1 }
0x1022   :  { %v3350_v8 = vld [vmem:[%s4246_s10 + $0x30] sm:$0xff]  }
0x1023   :  { %v2414_v9 = vpop.f32.mrf.mxu1 }
0x1024   :  { %v3328_v10 = vpack.i.bf16 %v2414_v9, %v2366_v60  ;;  %v2875_v60 = vld [vmem:[%s4242_s6 + $0x1] ss:$0 sm:$0xff]  ;;  %v3351_v9 = vld [vmem:[%s4246_s10 + $0x28] sm:$0xff]  }
0x1025   :  { %v3227_v11 = vpop.f32.mrf.mxu1 }
0x1026   :  { %3329 = vrot.lane.b32.xlu1 %v3328_v10, %s3545_s11  ;;  %v3352_v10 = vld [vmem:[%s4246_s10 + $0x20] sm:$0xff]   ;;  %v2881_v11 = vld [vmem:[#allocation5 + $0x1] ss:$0 sm:$0xff] }
0x1027   :  { %v2417_v14 = vpop.f32.mrf.mxu1 }
0x1029   :  { %v3228_v18 = vpop.f32.mrf.mxu1 }
0x105b   :  { %v3320_v19 = vpop.permute.xlu1 %3319 }
0x105c   :  { %v3322_v12 = vunpack.i.h.bf16 %v3320_v19  ;;  %v3321_v53 = vunpack.i.l.bf16 %v3320_v19 }
0x105e   :  { %v2445_v0 = vsel %vm230_vm2, %v2126_v7, %v3322_v12  ;;  %v2444_v4 = vsel %vm230_vm2, %v2078_v38, %v3321_v53 }
0x1090   :  { %v3325_v20 = vpop.permute.xlu0 %3324 }
0x1091   :  { %v3327_v23 = vunpack.i.h.bf16 %v3325_v20  ;;  %v3326_v24 = vunpack.i.l.bf16 %v3325_v20 }
0x1093   :  { %v2447_v17 = vsel %vm1127_vm4, %v2445_v0, %v3327_v23  ;;  %v2446_v26 = vsel %vm1127_vm4, %v2444_v4, %v3326_v24 }
0x1098   :  { %v3330_v25 = vpop.permute.xlu1 %3329 }
0x1099   :  { %v3332_v57 = vunpack.i.h.bf16 %v3330_v25  ;;  %v3331_v5 = vunpack.i.l.bf16 %v3330_v25 }
0x109b   :  { %v2449_v27 = vsel %vm1130_vm5, %v2447_v17, %v3332_v57  ;;  %v2448_v28 = vsel %vm1130_vm5, %v2446_v26, %v3331_v5 }
0x109c   :  { %v2450_v29 = vpack.c.bf16 %v2449_v27, %v2448_v28  ;;  %v2893_v28 = vld [vmem:[#allocation7 + $0x1] ss:$0 sm:$0xff] }
0x109e   :  { %3234 = vmatmul.mubr.msk.bf16.vlgmr.msra.gmra.mxu0 %vm94_vm0, %v2450_v29 }
0x109f   :  { %3253 = vmatprep.mubr.msk.bf16.mxu0 %vm3539_vm1, %v3538_v15  ;;  %3246 = vmatpush3.bf16.msra.mxu0 %v3349_v39 }
0x10a0   :  { %3247 = vmatprep.subr.bf16.mxu0 %v3538_v15 }
0x10a3   :  { %3248 = vmatpush3.bf16.msra.mxu0 %v3350_v8 }
0x10a4   :  { %3249 = vmatprep.subr.bf16.mxu0 %v3538_v15 }
0x10a7   :  { %3250 = vmatpush3.bf16.msra.mxu0 %v3351_v9 }
0x10a8   :  { %3251 = vmatprep.subr.bf16.mxu0 %v3538_v15 }
0x10ab   :  { %3252 = vmatpush3.bf16.msra.mxu0 %v3352_v10 }
0x115e   :  { %v2513_v21 = vpop.f32.mrf.mxu0 }
0x115f   :  { %v2514_v1 = vadd.f32 %v2869_v30, %v2513_v21 }
0x1160   :  { %v3235_v31 = vpop.f32.mrf.mxu0 }
0x1161   :  { %v4173_v32 = vadd.f32 %v2514_v1, %v3933_v16 }
0x1162   :  { %v2516_v33 = vpop.f32.mrf.mxu0 }
0x1163   :  { %v2517_v35 = vadd.f32 %v2869_v30, %v2516_v33  ;;  %v2526_v36 = vsel %vm94_vm0, %v4173_v32, 0.0 }
0x1164   :  { %2527 = vadd.xlane.f32.xlu0 %v2526_v36  ;;  %v3236_v7 = vpop.f32.mrf.mxu0 }
0x1165   :  { %v4178_v37 = vadd.f32 %v2517_v35, %v3938_v22 }
0x1167   :  { %v2529_v38 = vsel %vm94_vm0, %v4178_v37, 0.0 }
0x1168   :  { %2530 = vadd.xlane.f32.xlu1 %v2529_v38 }
0x11ed   :  { %v2528_v52 = vpop.xlane.xlu0 %2527 }
0x11ee   :  { %v2532_v34 = vmul.f32 0.03125, %v2528_v52 }
0x11f0   :  { %v2534_v59 = vsub.f32 %v4173_v32, %v2532_v34 }
0x11f1   :  { %v2531_v16 = vpop.xlane.xlu1 %2530 }
0x11f2   :  { %v2533_v40 = vmul.f32 0.03125, %v2531_v16  ;;  %v2536_v41 = vmul.f32 %v2534_v59, %v2534_v59 }
0x11f4   :  { %v2535_v42 = vsub.f32 %v4178_v37, %v2533_v40  ;;  %v2538_v43 = vsel %vm94_vm0, %v2536_v41, 0.0 }
0x11f5   :  { %2539 = vadd.xlane.f32.xlu0 %v2538_v43 }
0x11f6   :  { %v2537_v44 = vmul.f32 %v2535_v42, %v2535_v42 }
0x11f8   :  { %v2541_v22 = vsel %vm94_vm0, %v2537_v44, 0.0 }
0x11f9   :  { %2542 = vadd.xlane.f32.xlu0 %v2541_v22 }
0x127e   :  { %v2540_v49 = vpop.xlane.xlu0 %2539 }
0x127f   :  { %v2544_v51 = vmul.f32 0.03125, %v2540_v49 }
0x1281   :  { %v2546_v54 = vadd.f32 1e-05, %v2544_v51 }
0x1282   :  { %v2543_v55 = vpop.xlane.xlu0 %2542 }
0x1283   :  { %3433 = vrsqrt.f32 %v2546_v54  ;;  %v2545_v56 = vmul.f32 0.03125, %v2543_v55  ;;  %v2899_v55 = vld [vmem:[%s4248_s12] ss:$0 sm:$0xff] }
0x1285   :  { %v2547_v48 = vadd.f32 1e-05, %v2545_v56 }
0x1287   :  { %3435 = vrsqrt.f32 %v2547_v48  ;;  %v2900_v48 = vld [vmem:[%s4249_s13] ss:$0 sm:$0xff] }
0x1290   :  { %v3434_v50 = vpop.eup %3433 }
0x1291   :  { %v2550_v13 = vmul.f32 %v3434_v50, %v2534_v59 }
0x1293   :  { %v2558_v63 = vmul.f32 %v2875_v60, %v2550_v13 }
0x1294   :  { %v3436_v61 = vpop.eup %3435 }
0x1295   :  { %v2551_v62 = vmul.f32 %v3436_v61, %v2535_v42  ;;  %v2566_v3 = vadd.f32 %v2876_v58, %v2558_v63 }
0x1297   :  { %v2559_v2 = vmul.f32 %v2875_v60, %v2551_v62 }
0x1299   :  { %v2567_v6 = vadd.f32 %v2876_v58, %v2559_v2 }
0x129b   :  { %v2568_v47 = vpack.c.bf16 %v2567_v6, %v2566_v3 }
0x129d   :  { %3242 = vmatmul.mubr.msk.bf16.vlgmr.msra.gmra.mxu1 %vm94_vm0, %v2568_v47 }
0x135d   :  { %v2631_v14 = vpop.f32.mrf.mxu1 }
0x135e   :  { %v2632_v18 = vadd.f32 %v2881_v11, %v2631_v14 }
0x135f   :  { %v3243_v19 = vpop.f32.mrf.mxu1 }
0x1360   :  { %v2640_v20 = vmul.f32 0.70710677, %v2632_v18  ;;  %v2638_v15 = vmul.f32 0.5, %v2632_v18 }
0x1361   :  { %v2634_v12 = vpop.f32.mrf.mxu1 }
0x1362   :  { %3437 = verf.f32 %v2640_v20  ;;  %v2635_v53 = vadd.f32 %v2881_v11, %v2634_v12 }
0x1363   :  { %v3244_v23 = vpop.f32.mrf.mxu1 }
0x1364   :  { %v2641_v24 = vmul.f32 0.70710677, %v2635_v53  ;;  %v2639_v57 = vmul.f32 0.5, %v2635_v53 }
0x1366   :  { %3439 = verf.f32 %v2641_v24 }
0x136f   :  { %v3438_v25 = vpop.eup %3437 }
0x1370   :  { %v2644_v0 = vadd.f32 1.0, %v3438_v25 }
0x1372   :  { %v2646_v17 = vmul.f32 %v2644_v0, %v2638_v15 }
0x1373   :  { %v3440_v4 = vpop.eup %3439 }
0x1374   :  { %v2645_v5 = vadd.f32 1.0, %v3440_v4 }
0x1376   :  { %v2647_v26 = vmul.f32 %v2645_v5, %v2639_v57 }
0x1378   :  { %v2648_v27 = vpack.c.bf16 %v2647_v26, %v2646_v17 }
0x137a   :  { %3254 = vmatmul.mubr.msk.bf16.vlgmr.msra.gmra.mxu0 %vm1365_vm6, %v2648_v27 }
0x143a   :  { %v2727_v29 = vpop.f32.mrf.mxu0 }
0x143b   :  { %v2728_v30 = vadd.f32 %v2893_v28, %v2727_v29 }
0x143c   :  { %v3255_v21 = vpop.f32.mrf.mxu0 }
0x143d   :  { %v2734_v1 = vadd.f32 %v2728_v30, %v4173_v32 }
0x143e   :  { %v2730_v31 = vpop.f32.mrf.mxu0 }
0x143f   :  { %v2731_v33 = vadd.f32 %v2893_v28, %v2730_v31  ;;  %v2738_v35 = vsel %vm94_vm0, %v2734_v1, 0.0 }
0x1440   :  { %2739 = vadd.xlane.f32.xlu0 %v2738_v35  ;;  %v3256_v36 = vpop.f32.mrf.mxu0 }
0x1441   :  { %v2735_v7 = vadd.f32 %v2731_v33, %v4178_v37 }
0x1443   :  { %v2741_v38 = vsel %vm94_vm0, %v2735_v7, 0.0 }
0x1444   :  { %2742 = vadd.xlane.f32.xlu1 %v2741_v38 }
0x14c9   :  { %v2740_v52 = vpop.xlane.xlu0 %2739 }
0x14ca   :  { %v2744_v34 = vmul.f32 0.03125, %v2740_v52 }
0x14cc   :  { %v2746_v59 = vsub.f32 %v2734_v1, %v2744_v34 }
0x14cd   :  { %v2743_v16 = vpop.xlane.xlu1 %2742 }
0x14ce   :  { %v2745_v40 = vmul.f32 0.03125, %v2743_v16  ;;  %v2748_v41 = vmul.f32 %v2746_v59, %v2746_v59 }
0x14d0   :  { %v2747_v42 = vsub.f32 %v2735_v7, %v2745_v40  ;;  %v2750_v32 = vsel %vm94_vm0, %v2748_v41, 0.0 }
0x14d1   :  { %2751 = vadd.xlane.f32.xlu0 %v2750_v32 }
0x14d2   :  { %v2749_v43 = vmul.f32 %v2747_v42, %v2747_v42 }
0x14d4   :  { %v2753_v44 = vsel %vm94_vm0, %v2749_v43, 0.0 }
0x14d5   :  { %2754 = vadd.xlane.f32.xlu1 %v2753_v44 }
0x155a   :  { %v2752_v22 = vpop.xlane.xlu0 %2751 }
0x155b   :  { %v2756_v45 = vmul.f32 0.03125, %v2752_v22 }
0x155d   :  { %v2758_v37 = vadd.f32 1e-05, %v2756_v45 }
0x155e   :  { %v2755_v46 = vpop.xlane.xlu1 %2754 }
0x155f   :  { %3441 = vrsqrt.f32 %v2758_v37  ;;  %v2757_v49 = vmul.f32 0.03125, %v2755_v46 }
0x1561   :  { %v2759_v51 = vadd.f32 1e-05, %v2757_v49 }
0x1563   :  { %3443 = vrsqrt.f32 %v2759_v51 }
0x156c   :  { %v3442_v54 = vpop.eup %3441 }
0x156d   :  { %v2762_v56 = vmul.f32 %v3442_v54, %v2746_v59 }
0x156f   :  { %v2770_v50 = vmul.f32 %v2899_v55, %v2762_v56 }
0x1570   :  { %v3444_v13 = vpop.eup %3443 }
0x1571   :  { %v2763_v60 = vmul.f32 %v3444_v13, %v2747_v42  ;;  %v2778_v61 = vadd.f32 %v2900_v48, %v2770_v50 }
0x1573   :  { %v2771_v62 = vmul.f32 %v2899_v55, %v2763_v60  ;;  %2780 = vst.msk [vmem:[#allocation8] sm:$0xff] %vm94_vm0, %v2778_v61 }
0x1575   :  { %v2779_v63 = vadd.f32 %v2900_v48, %v2771_v62 }
0x1577   :  { %2781 = vst.msk [vmem:[#allocation8 + $0x8] sm:$0xff] %vm94_vm0, %v2779_v63 }
0x1578   :  { %3516 = shalt.err (!%p3513_p5)
}
0x1579   :  { %2793 = dma.vmem_to_hbm [thread:$0]  %s2788_s2, 256, %s4250_s14, [#allocation4], %s3535_s23, %s3535_s23, %s3536_s24  }
0x157a   :  { %3529 = dma.done.wait [#allocation4], 256  }
0x157b   :  { %3530 = vsyncadd [#allocation4], 4294967040 }
0x157c   :  { %2797 = vsyncpa [#allocation3], 1 }
0x157d   :  { %2798 = vsyncpa [#allocation6], 1 }
0x157e   :  { %2799 = vsyncpa [#allocation4], 1 }

</bundles_post_ra>
